<compile_context>
chip_gen: v6e
topology: v6e:2x2x1
jax: 0.10.0
libtpu: 0.0.40
codegen_flags: <defaults>
</compile_context>

<pallas_src>
import functools

import jax
import jax.numpy as jnp
from jax import lax
from jax.experimental import pallas as pl
from jax.experimental.pallas import tpu as pltpu


_UNROLL = 4  # static unroll factor of the per-chunk time loop


# ---------------------------------------------------------------------------
# Pallas kernel: one (batch block, time chunk) per grid step.
# ---------------------------------------------------------------------------
def _uni_lstm_kernel(maxlen_ref, lens_ref, feat_ref,
                     wih0_ref, whh0_ref, b0_ref,
                     wih1_ref, whh1_ref, b1_ref,
                     wp_ref, bp_ref,
                     hid_ref, proj_ref,
                     h0_ref, c0_ref, h1_ref, c1_ref, gx0_ref):
    Tc, Bb, I = feat_ref.shape
    H = whh0_ref.shape[0]
    H4 = 4 * H
    mdt = whh0_ref.dtype                      # MXU operand dtype (f32 or bf16)
    t0 = pl.program_id(1) * Tc

    # (Re)initialise the carried recurrent state at the start of each batch
    # block's time sweep (time is the innermost, 'arbitrary' grid axis; the
    # scratch persists across grid steps).
    @pl.when(pl.program_id(1) == 0)
    def _():
        z = jnp.zeros((Bb, H), jnp.float32)
        h0_ref[...] = z
        c0_ref[...] = z
        h1_ref[...] = z
        c1_ref[...] = z

    # Chunk-skip: per-batch-block max length was scalar-prefetched into SMEM.
    live = t0 < maxlen_ref[pl.program_id(0)]

    @pl.when(jnp.logical_not(live))
    def _():
        # Chunk lies entirely beyond every sequence in this batch block:
        # pad_packed_sequence emits zeros and Linear(0) is just its bias.
        hid_ref[...] = jnp.zeros_like(hid_ref)
        proj_ref[...] = jnp.broadcast_to(bp_ref[...], proj_ref.shape)

    @pl.when(live)
    def _():
        # Hoisted layer-0 input projection: ONE (Tc*Bb, I) @ (I, 4H) matmul per
        # chunk (bias fused) instead of Tc tiny per-step matmuls.
        x2d = feat_ref[...].reshape(Tc * Bb, I).astype(mdt)
        gx0 = jnp.dot(x2d, wih0_ref[...], preferred_element_type=jnp.float32)
        gx0_ref[...] = (gx0 + b0_ref[...]).reshape(Tc, Bb, H4)

        # Hoist loop-invariant loads / broadcasts off the per-step serial path.
        whh0 = whh0_ref[...]
        wih1 = wih1_ref[...]
        whh1 = whh1_ref[...]
        b1b = jnp.broadcast_to(b1_ref[...], (Bb, H4))
        lens = lens_ref[...]                  # (Bb, 1) int32

        def act(gates, c):
            # PyTorch gate order i, f, g, o.  The i/f/o columns of the gate
            # weights/biases were pre-scaled by 0.5 in the wrapper so a single
            # tanh of the full 4H slab implements sigmoid(x)=0.5*tanh(x/2)+0.5
            # (one EUP push instead of exp+reciprocal per sigmoid).
            t = jnp.tanh(gates)
            i = 0.5 * t[:, 0 * H:1 * H] + 0.5
            f = 0.5 * t[:, 1 * H:2 * H] + 0.5
            g = t[:, 2 * H:3 * H]
            o = 0.5 * t[:, 3 * H:4 * H] + 0.5
            c_new = f * c + i * g
            return o * jnp.tanh(c_new), c_new

        def one_step(tt):
            # NOTE: carried h/c state is intentionally unmasked (see header).
            h0 = h0_ref[...]
            h1 = h1_ref[...]

            # Layer 0: only the recurrent dot remains on the serial chain.
            g0 = gx0_ref[tt] + jnp.dot(h0.astype(mdt), whh0,
                                       preferred_element_type=jnp.float32)
            h0n, c0n = act(g0, c0_ref[...])
            h0_ref[...] = h0n
            c0_ref[...] = c0n

            # Layer 1: the h1 @ Whh1 (+bias) half does not depend on h0n and
            # sits off the critical chain; only h0n @ Wih1 is serialised.
            g1_rest = jnp.dot(h1.astype(mdt), whh1,
                              preferred_element_type=jnp.float32) + b1b
            g1 = jnp.dot(h0n.astype(mdt), wih1,
                         preferred_element_type=jnp.float32) + g1_rest
            h1n, c1n = act(g1, c1_ref[...])
            h1_ref[...] = h1n
            c1_ref[...] = c1n

            # pad_packed_sequence zero-pads: emit 0 at t >= length.
            valid = lens > (t0 + tt)
            hid_ref[tt] = jnp.where(valid, h1n, 0.0)

        def step_block(blk, carry):
            base = pl.multiple_of(blk * _UNROLL, _UNROLL)
            for u in range(_UNROLL):          # statically unrolled inner steps
                one_step(base + u)
            return carry

        lax.fori_loop(0, Tc // _UNROLL, step_block, 0)

        # Hoisted output projection: ONE (Tc*Bb, H) @ (H, I) matmul + lane-dense
        # chunk-wide store, off the serial recurrence path.
        seq = hid_ref[...].reshape(Tc * Bb, H).astype(mdt)
        p = jnp.dot(seq, wp_ref[...],
                    preferred_element_type=jnp.float32) + bp_ref[...]
        proj_ref[...] = p.reshape(Tc, Bb, I)


# ---------------------------------------------------------------------------
# Wrapper helpers
# ---------------------------------------------------------------------------
def _round_up(x, m):
    return -(-x // m) * m


def _vmem_capacity_bytes():
    # Per-generation VMEM (128 MiB v5e/v6e, 64 MiB v7x); conservative fallback.
    try:
        return int(pltpu.get_tpu_info().vmem_capacity_bytes)
    except Exception:
        return 64 << 20


def _scale_ifo(w, H):
    # sigmoid(x) == 0.5*tanh(x/2) + 0.5: pre-halve the i/f/o gate columns so the
    # kernel needs a single tanh per 4H gate slab (the g columns stay unscaled).
    scale = jnp.concatenate([jnp.full((2 * H,), 0.5, jnp.float32),
                             jnp.ones((H,), jnp.float32),
                             jnp.full((H,), 0.5, jnp.float32)])
    return w * scale


def _pick_tiles(B, T, I, H, block_t, block_b, wbytes, vmem_cap):
    """Generation-aware, VMEM-budgeted (time chunk, batch block) selection."""
    if block_b is None:
        Bb = min(256, _round_up(B, 8))        # MXU-row-sized batch tile
        # Keep >= 2 batch blocks when the batch allows it so the 'parallel'
        # axis can shard across TensorCores (v7x has two per chip).
        while Bb > 8 and _round_up(B, Bb) // Bb < 2:
            Bb = _round_up(Bb // 2, 8)
    else:
        Bb = max(8, _round_up(int(block_b), 8))
    if block_t is None:
        Tc = 128                              # amortise per-grid-step overhead
    else:
        Tc = max(8, _round_up(int(block_t), 8))
    Tc = min(Tc, _round_up(T, 8))

    # wih0, whh0, wih1, whh1, wp (+ f32 biases); assume double-buffered.
    weight_bytes = (4 * H * (I + 3 * H) + H * I) * wbytes + (8 * H + I) * 4

    def need(tc, bb):
        stream = 2 * tc * bb * (2 * I + H) * 4    # feat/hid/proj, 2x buffered
        gates = tc * bb * 4 * H * 4               # gx0 scratch
        state = 4 * bb * H * 4                    # h0/c0/h1/c1 scratch
        return stream + gates + state + 2 * weight_bytes + (2 << 20)

    budget = int(0.8 * vmem_cap)
    while Tc > 8 and need(Tc, Bb) > budget:
        Tc = _round_up(Tc // 2, 8)
    while Bb > 8 and need(Tc, Bb) > budget:
        Bb = _round_up(Bb // 2, 8)
    return Tc, Bb, need(Tc, Bb), weight_bytes


# ---------------------------------------------------------------------------
# Forward wrapper
# ---------------------------------------------------------------------------
@functools.partial(jax.jit, static_argnames=("block_t", "block_b", "use_bf16"))
def uni_lstm_forward(feat, lengths, params, *, block_t=None, block_b=None,
                     use_bf16=True):
    """feat: (B, T, I) float32, lengths: (B,) int -> (hidden (B,T,H), proj (B,T,I))."""
    B, T, I = feat.shape
    H = params["whh0"].shape[0]
    H4 = 4 * H

    wbytes = 2 if use_bf16 else 4
    vmem_cap = _vmem_capacity_bytes()
    Tc, Bb, vmem_need, weight_bytes = _pick_tiles(
        B, T, I, H, block_t, block_b, wbytes, vmem_cap)
    T_pad = _round_up(T, Tc)
    B_pad = _round_up(B, Bb)

    # Time-major layout so dynamic per-timestep Ref indices are on the leading
    # dim (see TODO in the header about removing these HBM transposes).
    feat_tm = jnp.transpose(feat, (1, 0, 2)).astype(jnp.float32)   # (T, B, I)
    feat_tm = jnp.pad(feat_tm, ((0, T_pad - T), (0, B_pad - B), (0, 0)))
    lens_flat = jnp.pad(lengths.astype(jnp.int32), (0, B_pad - B))
    lens = lens_flat.reshape(B_pad, 1)
    # Per-batch-block max length (scalar-prefetched) -> skip all-padding chunks.
    maxlen = lens_flat.reshape(B_pad // Bb, Bb).max(axis=1)

    # bf16 MXU weight operands by default; biases/gate math/accumulation in f32.
    wdt = jnp.bfloat16 if use_bf16 else jnp.float32
    wih0 = _scale_ifo(params["wih0"], H).astype(wdt)                # (I, 4H)
    whh0 = _scale_ifo(params["whh0"], H).astype(wdt)                # (H, 4H)
    wih1 = _scale_ifo(params["wih1"], H).astype(wdt)                # (H, 4H)
    whh1 = _scale_ifo(params["whh1"], H).astype(wdt)                # (H, 4H)
    b0 = _scale_ifo(params["b0"], H).astype(jnp.float32)            # (1, 4H)
    b1 = _scale_ifo(params["b1"], H).astype(jnp.float32)            # (1, 4H)
    wp = params["wp"].astype(wdt)                                   # (H, I)
    bp = params["bp"].astype(jnp.float32)                           # (1, I)

    grid = (B_pad // Bb, T_pad // Tc)

    in_specs = [
        pl.BlockSpec((Bb, 1), lambda b, t, ml: (b, 0)),             # lengths
        pl.BlockSpec((Tc, Bb, I), lambda b, t, ml: (t, b, 0)),      # feat chunk
        pl.BlockSpec((I, H4), lambda b, t, ml: (0, 0)),             # wih0
        pl.BlockSpec((H, H4), lambda b, t, ml: (0, 0)),             # whh0
        pl.BlockSpec((1, H4), lambda b, t, ml: (0, 0)),             # b0
        pl.BlockSpec((H, H4), lambda b, t, ml: (0, 0)),             # wih1
        pl.BlockSpec((H, H4), lambda b, t, ml: (0, 0)),             # whh1
        pl.BlockSpec((1, H4), lambda b, t, ml: (0, 0)),             # b1
        pl.BlockSpec((H, I), lambda b, t, ml: (0, 0)),              # wp
        pl.BlockSpec((1, I), lambda b, t, ml: (0, 0)),              # bp
    ]
    out_specs = [
        pl.BlockSpec((Tc, Bb, H), lambda b, t, ml: (t, b, 0)),      # hidden chunk
        pl.BlockSpec((Tc, Bb, I), lambda b, t, ml: (t, b, 0)),      # proj chunk
    ]
    scratch_shapes = [
        pltpu.VMEM((Bb, H), jnp.float32),                           # h0
        pltpu.VMEM((Bb, H), jnp.float32),                           # c0
        pltpu.VMEM((Bb, H), jnp.float32),                           # h1
        pltpu.VMEM((Bb, H), jnp.float32),                           # c1
        pltpu.VMEM((Tc, Bb, H4), jnp.float32),                      # layer-0 gates
    ]

    vmem_limit = int(min(int(0.9 * vmem_cap),
                         max(vmem_need + (8 << 20), 32 << 20)))

    cost = pl.CostEstimate(
        flops=int(2 * T_pad * B_pad * (4 * H * (I + 3 * H) + H * I)),
        transcendentals=int(10 * T_pad * B_pad * H),
        bytes_accessed=int(4 * T_pad * B_pad * (2 * I + H) + weight_bytes),
    )

    hid_tm, proj_tm = pl.pallas_call(
        _uni_lstm_kernel,
        out_shape=(jax.ShapeDtypeStruct((T_pad, B_pad, H), jnp.float32),
                   jax.ShapeDtypeStruct((T_pad, B_pad, I), jnp.float32)),
        grid_spec=pltpu.PrefetchScalarGridSpec(
            num_scalar_prefetch=1,
            grid=grid,
            in_specs=in_specs,
            out_specs=out_specs,
            scratch_shapes=scratch_shapes),
        compiler_params=pltpu.CompilerParams(
            dimension_semantics=("parallel", "arbitrary"),
            vmem_limit_bytes=vmem_limit),
        cost_estimate=cost,
    )(maxlen, lens, feat_tm, wih0, whh0, b0, wih1, whh1, b1, wp, bp)

    hid = jnp.transpose(hid_tm[:T, :B], (1, 0, 2))
    proj = jnp.transpose(proj_tm[:T, :B], (1, 0, 2))
    return hid, proj


# ---------------------------------------------------------------------------
# Deterministic parameter init (same shapes as torch.nn.LSTM / Linear).
# LSTM layer k: weight_ih (4H, in), weight_hh (4H, H), two (4H,) biases.
# Stored pre-transposed to (in, 4H) / (H, 4H) with the two biases fused.
# ---------------------------------------------------------------------------
def init_params(key, input_size, hidden_size):
    H = hidden_size
    bound = 1.0 / jnp.sqrt(jnp.float32(H))
    ks = jax.random.split(key, 12)
    u = lambda k, shape: jax.random.uniform(k, shape, jnp.float32, -bound, bound)
    return {
        "wih0": u(ks[0], (input_size, 4 * H)),
        "whh0": u(ks[1], (H, 4 * H)),
        "b0": u(ks[2], (1, 4 * H)) + u(ks[3], (1, 4 * H)),
        "wih1": u(ks[4], (H, 4 * H)),
        "whh1": u(ks[5], (H, 4 * H)),
        "b1": u(ks[6], (1, 4 * H)) + u(ks[7], (1, 4 * H)),
        "wp": u(ks[8], (H, input_size)),
        "bp": u(ks[9], (1, input_size)),
    }


# ---------------------------------------------------------------------------
# Pure-JAX reference (same math, lax.scan) for a numerical sanity check.
# ---------------------------------------------------------------------------
def uni_lstm_reference(feat, lengths, params):
    B, T, I = feat.shape
    H = params["whh0"].shape[0]

    def cell(x, h, c, wih, whh, b):
        gates = x @ wih + h @ whh + b
        i = jax.nn.sigmoid(gates[:, 0 * H:1 * H])
        f = jax.nn.sigmoid(gates[:, 1 * H:2 * H])
        g = jnp.tanh(gates[:, 2 * H:3 * H])
        o = jax.nn.sigmoid(gates[:, 3 * H:4 * H])
        c_new = f * c + i * g
        return o * jnp.tanh(c_new), c_new

    def step(carry, xs):
        h0, c0, h1, c1 = carry
        x, t = xs
        mask = (lengths.reshape(B, 1) > t).astype(jnp.float32)
        h0n, c0n = cell(x, h0, c0, params["wih0"], params["whh0"], params["b0"])
        h0 = mask * h0n + (1 - mask) * h0
        c0 = mask * c0n + (1 - mask) * c0
        h1n, c1n = cell(h0, h1, c1, params["wih1"], params["whh1"], params["b1"])
        h1 = mask * h1n + (1 - mask) * h1
        c1 = mask * c1n + (1 - mask) * c1
        return (h0, c0, h1, c1), mask * h1

    z = jnp.zeros((B, H), jnp.float32)
    _, outs = lax.scan(step, (z, z, z, z),
                       (jnp.transpose(feat, (1, 0, 2)), jnp.arange(T)))
    seq = jnp.transpose(outs, (1, 0, 2))
    return seq, seq @ params["wp"] + params["bp"]


if __name__ == "__main__":
    # batch, seq_len, input_size, hidden_size (num_layers = 2)
    B, T, I, H = 10, 12, 16, 32

    key = jax.random.PRNGKey(0)
    k_feat, k_param = jax.random.split(key)
    feat = jax.random.normal(k_feat, (B, T, I), jnp.float32)
    lengths = jnp.array([12, 9, 5, 1, 12, 3, 7, 12, 2, 6], jnp.int32)
    params = init_params(k_param, I, H)

    ref_hidden, ref_proj = uni_lstm_reference(feat, lengths, params)

    # f32 path with small explicit tiles: 2 batch blocks x 2 time chunks, and
    # the second time chunk of batch block 1 (max length 6 <= t0=8) exercises
    # the scalar-prefetched dead-chunk skip path.
    hidden, proj = uni_lstm_forward(feat, lengths, params,
                                    block_t=8, block_b=8, use_bf16=False)
    jax.block_until_ready((hidden, proj))
    assert hidden.shape == (B, T, H) and proj.shape == (B, T, I)
    assert jnp.allclose(hidden, ref_hidden, atol=2e-4, rtol=2e-4)
    assert jnp.allclose(proj, ref_proj, atol=2e-4, rtol=2e-4)

    # Default path: auto (generation-aware) tile sizes + bf16 MXU weight
    # operands; f32 state/accumulation, so only a loose numerical check applies.
    hidden_bf, proj_bf = uni_lstm_forward(feat, lengths, params)
    jax.block_until_ready((hidden_bf, proj_bf))
    assert jnp.allclose(hidden_bf, ref_hidden, atol=0.25)
    assert jnp.allclose(proj_bf, ref_proj, atol=0.25)

    print("KERNEL_OK")
</pallas_src>

<mosaic_0001>
module attributes {stable_mosaic.version = 11 : i64} {
  func.func @_uni_lstm_kernel(%arg0: i32, %arg1: i32, %arg2: memref<2xi32, #tpu.memory_space<smem>>, %arg3: memref<8x1xi32, #tpu.memory_space<vmem>>, %arg4: memref<8x8x16xf32, #tpu.memory_space<vmem>>, %arg5: memref<16x128xf32, #tpu.memory_space<vmem>>, %arg6: memref<32x128xf32, #tpu.memory_space<vmem>>, %arg7: memref<1x128xf32, #tpu.memory_space<vmem>>, %arg8: memref<32x128xf32, #tpu.memory_space<vmem>>, %arg9: memref<32x128xf32, #tpu.memory_space<vmem>>, %arg10: memref<1x128xf32, #tpu.memory_space<vmem>>, %arg11: memref<32x16xf32, #tpu.memory_space<vmem>>, %arg12: memref<1x16xf32, #tpu.memory_space<vmem>>, %arg13: memref<8x8x32xf32, #tpu.memory_space<vmem>>, %arg14: memref<8x8x16xf32, #tpu.memory_space<vmem>>, %arg15: memref<8x32xf32, #tpu.memory_space<vmem>>, %arg16: memref<8x32xf32, #tpu.memory_space<vmem>>, %arg17: memref<8x32xf32, #tpu.memory_space<vmem>>, %arg18: memref<8x32xf32, #tpu.memory_space<vmem>>, %arg19: memref<8x8x128xf32, #tpu.memory_space<vmem>>) attributes {dimension_semantics = [#tpu.dimension_semantics<parallel>, #tpu.dimension_semantics<arbitrary>], iteration_bounds = array<i64: 2, 2>, scalar_prefetch = 1 : i64, scratch_operands = 5 : i64, tpu.core_type = #tpu.core_type<tc>, window_params = [{transform_indices = @transform_0, window_bounds = array<i64: 8, 1>}, {transform_indices = @transform_1, window_bounds = array<i64: 8, 8, 16>}, {pipeline_mode = #tpu.pipeline_mode<synchronous>, transform_indices = @transform_2, window_bounds = array<i64: 16, 128>}, {pipeline_mode = #tpu.pipeline_mode<synchronous>, transform_indices = @transform_3, window_bounds = array<i64: 32, 128>}, {pipeline_mode = #tpu.pipeline_mode<synchronous>, transform_indices = @transform_4, window_bounds = array<i64: 1, 128>}, {pipeline_mode = #tpu.pipeline_mode<synchronous>, transform_indices = @transform_5, window_bounds = array<i64: 32, 128>}, {pipeline_mode = #tpu.pipeline_mode<synchronous>, transform_indices = @transform_6, window_bounds = array<i64: 32, 128>}, {pipeline_mode = #tpu.pipeline_mode<synchronous>, transform_indices = @transform_7, window_bounds = array<i64: 1, 128>}, {pipeline_mode = #tpu.pipeline_mode<synchronous>, transform_indices = @transform_8, window_bounds = array<i64: 32, 16>}, {pipeline_mode = #tpu.pipeline_mode<synchronous>, transform_indices = @transform_9, window_bounds = array<i64: 1, 16>}, {transform_indices = @transform_10, window_bounds = array<i64: 8, 8, 32>}, {transform_indices = @transform_11, window_bounds = array<i64: 8, 8, 16>}]} {
    %c8_i32 = arith.constant 8 : i32
    %0 = arith.muli %arg1, %c8_i32 : i32
    %c0_i32 = arith.constant 0 : i32
    %1 = arith.cmpi eq, %arg1, %c0_i32 : i32
    %2 = arith.extui %1 : i1 to i32
    %c0_i32_0 = arith.constant 0 : i32
    %3 = arith.cmpi ne, %2, %c0_i32_0 : i32
    scf.if %3 {
      %cst = arith.constant 0.000000e+00 : f32
      %12 = vector.broadcast %cst : f32 to vector<8x32xf32>
      %c0 = arith.constant 0 : index
      %c0_3 = arith.constant 0 : index
      %13 = vector.load %arg15[%c0, %c0_3] : memref<8x32xf32, #tpu.memory_space<vmem>>, vector<8x32xf32>
      tpu.vector_store %arg15[%c0, %c0_3], %12 {strides = array<i32>} : memref<8x32xf32, #tpu.memory_space<vmem>>, vector<8x32xf32>,
      %c0_4 = arith.constant 0 : index
      %c0_5 = arith.constant 0 : index
      %14 = vector.load %arg16[%c0_4, %c0_5] : memref<8x32xf32, #tpu.memory_space<vmem>>, vector<8x32xf32>
      tpu.vector_store %arg16[%c0_4, %c0_5], %12 {strides = array<i32>} : memref<8x32xf32, #tpu.memory_space<vmem>>, vector<8x32xf32>,
      %c0_6 = arith.constant 0 : index
      %c0_7 = arith.constant 0 : index
      %15 = vector.load %arg17[%c0_6, %c0_7] : memref<8x32xf32, #tpu.memory_space<vmem>>, vector<8x32xf32>
      tpu.vector_store %arg17[%c0_6, %c0_7], %12 {strides = array<i32>} : memref<8x32xf32, #tpu.memory_space<vmem>>, vector<8x32xf32>,
      %c0_8 = arith.constant 0 : index
      %c0_9 = arith.constant 0 : index
      %16 = vector.load %arg18[%c0_8, %c0_9] : memref<8x32xf32, #tpu.memory_space<vmem>>, vector<8x32xf32>
      tpu.vector_store %arg18[%c0_8, %c0_9], %12 {strides = array<i32>} : memref<8x32xf32, #tpu.memory_space<vmem>>, vector<8x32xf32>,
    } else {
    }
    %4 = arith.index_cast %arg0 : i32 to index
    %5 = memref.load %arg2[%4] : memref<2xi32, #tpu.memory_space<smem>>
    %6 = arith.cmpi slt, %0, %5 : i32
    %true = arith.constant true
    %7 = arith.xori %6, %true : i1
    %8 = arith.extui %7 : i1 to i32
    %c0_i32_1 = arith.constant 0 : i32
    %9 = arith.cmpi ne, %8, %c0_i32_1 : i32
    scf.if %9 {
      %cst = arith.constant 0.000000e+00 : f32
      %12 = vector.broadcast %cst : f32 to vector<8x8x32xf32>
      %c0 = arith.constant 0 : index
      %c0_3 = arith.constant 0 : index
      %c0_4 = arith.constant 0 : index
      %13 = vector.load %arg13[%c0, %c0_3, %c0_4] : memref<8x8x32xf32, #tpu.memory_space<vmem>>, vector<8x8x32xf32>
      tpu.vector_store %arg13[%c0, %c0_3, %c0_4], %12 {strides = array<i32>} : memref<8x8x32xf32, #tpu.memory_space<vmem>>, vector<8x8x32xf32>,
      %c0_5 = arith.constant 0 : index
      %c0_6 = arith.constant 0 : index
      %14 = vector.load %arg12[%c0_5, %c0_6] : memref<1x16xf32, #tpu.memory_space<vmem>>, vector<1x16xf32>
      %15 = vector.shape_cast %14 : vector<1x16xf32> to vector<1x1x16xf32>
      %16 = vector.broadcast %15 : vector<1x1x16xf32> to vector<8x8x16xf32>
      %c0_7 = arith.constant 0 : index
      %c0_8 = arith.constant 0 : index
      %c0_9 = arith.constant 0 : index
      %17 = vector.load %arg14[%c0_7, %c0_8, %c0_9] : memref<8x8x16xf32, #tpu.memory_space<vmem>>, vector<8x8x16xf32>
      tpu.vector_store %arg14[%c0_7, %c0_8, %c0_9], %16 {strides = array<i32>} : memref<8x8x16xf32, #tpu.memory_space<vmem>>, vector<8x8x16xf32>,
    } else {
    }
    %10 = arith.extui %6 : i1 to i32
    %c0_i32_2 = arith.constant 0 : i32
    %11 = arith.cmpi ne, %10, %c0_i32_2 : i32
    scf.if %11 {
      %c0 = arith.constant 0 : index
      %c0_3 = arith.constant 0 : index
      %c0_4 = arith.constant 0 : index
      %12 = vector.load %arg4[%c0, %c0_3, %c0_4] : memref<8x8x16xf32, #tpu.memory_space<vmem>>, vector<8x8x16xf32>
      %13 = vector.shape_cast %12 : vector<8x8x16xf32> to vector<64x16xf32>
      %c0_5 = arith.constant 0 : index
      %c0_6 = arith.constant 0 : index
      %14 = vector.load %arg5[%c0_5, %c0_6] : memref<16x128xf32, #tpu.memory_space<vmem>>, vector<16x128xf32>
      %cst = arith.constant dense<0.000000e+00> : vector<64x128xf32>
      %15 = tpu.matmul %13, %14, %cst {dimension_numbers = #tpu.dot_dimension_numbers<[1], [0], [0], [1], [0, 0, 1, 1], [], []>} : vector<64x16xf32>, vector<16x128xf32>, vector<64x128xf32> -> vector<64x128xf32>
      %c0_7 = arith.constant 0 : index
      %c0_8 = arith.constant 0 : index
      %16 = vector.load %arg7[%c0_7, %c0_8] : memref<1x128xf32, #tpu.memory_space<vmem>>, vector<1x128xf32>
      %17 = vector.broadcast %16 : vector<1x128xf32> to vector<64x128xf32>
      %18 = arith.addf %15, %17 : vector<64x128xf32>
      %19 = vector.shape_cast %18 : vector<64x128xf32> to vector<8x8x128xf32>
      %c0_9 = arith.constant 0 : index
      %c0_10 = arith.constant 0 : index
      %c0_11 = arith.constant 0 : index
      %20 = vector.load %arg19[%c0_9, %c0_10, %c0_11] : memref<8x8x128xf32, #tpu.memory_space<vmem>>, vector<8x8x128xf32>
      tpu.vector_store %arg19[%c0_9, %c0_10, %c0_11], %19 {strides = array<i32>} : memref<8x8x128xf32, #tpu.memory_space<vmem>>, vector<8x8x128xf32>,
      %c0_12 = arith.constant 0 : index
      %c0_13 = arith.constant 0 : index
      %21 = vector.load %arg6[%c0_12, %c0_13] : memref<32x128xf32, #tpu.memory_space<vmem>>, vector<32x128xf32>
      %c0_14 = arith.constant 0 : index
      %c0_15 = arith.constant 0 : index
      %22 = vector.load %arg8[%c0_14, %c0_15] : memref<32x128xf32, #tpu.memory_space<vmem>>, vector<32x128xf32>
      %c0_16 = arith.constant 0 : index
      %c0_17 = arith.constant 0 : index
      %23 = vector.load %arg9[%c0_16, %c0_17] : memref<32x128xf32, #tpu.memory_space<vmem>>, vector<32x128xf32>
      %c0_18 = arith.constant 0 : index
      %c0_19 = arith.constant 0 : index
      %24 = vector.load %arg10[%c0_18, %c0_19] : memref<1x128xf32, #tpu.memory_space<vmem>>, vector<1x128xf32>
      %25 = vector.shape_cast %24 : vector<1x128xf32> to vector<1x128xf32>
      %26 = vector.broadcast %25 : vector<1x128xf32> to vector<8x128xf32>
      %c0_20 = arith.constant 0 : index
      %c0_21 = arith.constant 0 : index
      %27 = vector.load %arg3[%c0_20, %c0_21] : memref<8x1xi32, #tpu.memory_space<vmem>>, vector<8x1xi32>
      %c0_i32_22 = arith.constant 0 : i32
      %c2_i32 = arith.constant 2 : i32
      %28 = arith.addi %c0_i32_22, %c2_i32 : i32
      %c1_i32 = arith.constant 1 : i32
      scf.for %arg20 = %c0_i32_22 to %28 step %c1_i32  : i32 {
        %c4_i32 = arith.constant 4 : i32
        %38 = arith.muli %arg20, %c4_i32 : i32
        %39 = tpu.assume_multiple %38, 4 : i32
        %c0_i32_35 = arith.constant 0 : i32
        %40 = arith.addi %39, %c0_i32_35 : i32
        %c0_36 = arith.constant 0 : index
        %c0_37 = arith.constant 0 : index
        %41 = vector.load %arg15[%c0_36, %c0_37] : memref<8x32xf32, #tpu.memory_space<vmem>>, vector<8x32xf32>
        %c0_38 = arith.constant 0 : index
        %c0_39 = arith.constant 0 : index
        %42 = vector.load %arg17[%c0_38, %c0_39] : memref<8x32xf32, #tpu.memory_space<vmem>>, vector<8x32xf32>
        %43 = arith.index_cast %40 : i32 to index
        %c0_40 = arith.constant 0 : index
        %c0_41 = arith.constant 0 : index
        %44 = vector.load %arg19[%43, %c0_40, %c0_41] : memref<8x8x128xf32, #tpu.memory_space<vmem>>, vector<1x8x128xf32>
        %45 = vector.shape_cast %44 : vector<1x8x128xf32> to vector<8x128xf32>
        %cst_42 = arith.constant dense<0.000000e+00> : vector<8x128xf32>
        %46 = tpu.matmul %41, %21, %cst_42 {dimension_numbers = #tpu.dot_dimension_numbers<[1], [0], [0], [1], [0, 0, 1, 1], [], []>} : vector<8x32xf32>, vector<32x128xf32>, vector<8x128xf32> -> vector<8x128xf32>
        %47 = arith.addf %45, %46 : vector<8x128xf32>
        %c0_43 = arith.constant 0 : index
        %c0_44 = arith.constant 0 : index
        %48 = vector.load %arg16[%c0_43, %c0_44] : memref<8x32xf32, #tpu.memory_space<vmem>>, vector<8x32xf32>
        %49 = math.tanh %47 : vector<8x128xf32>
        %50 = vector.extract_strided_slice %49 {offsets = [0, 0], sizes = [8, 32], strides = [1, 1]} : vector<8x128xf32> to vector<8x32xf32>
        %cst_45 = arith.constant 5.000000e-01 : f32
        %51 = vector.broadcast %cst_45 : f32 to vector<8x32xf32>
        %52 = arith.mulf %51, %50 : vector<8x32xf32>
        %cst_46 = arith.constant 5.000000e-01 : f32
        %53 = vector.broadcast %cst_46 : f32 to vector<8x32xf32>
        %54 = arith.addf %52, %53 : vector<8x32xf32>
        %55 = vector.extract_strided_slice %49 {offsets = [0, 32], sizes = [8, 32], strides = [1, 1]} : vector<8x128xf32> to vector<8x32xf32>
        %cst_47 = arith.constant 5.000000e-01 : f32
        %56 = vector.broadcast %cst_47 : f32 to vector<8x32xf32>
        %57 = arith.mulf %56, %55 : vector<8x32xf32>
        %cst_48 = arith.constant 5.000000e-01 : f32
        %58 = vector.broadcast %cst_48 : f32 to vector<8x32xf32>
        %59 = arith.addf %57, %58 : vector<8x32xf32>
        %60 = vector.extract_strided_slice %49 {offsets = [0, 64], sizes = [8, 32], strides = [1, 1]} : vector<8x128xf32> to vector<8x32xf32>
        %61 = vector.extract_strided_slice %49 {offsets = [0, 96], sizes = [8, 32], strides = [1, 1]} : vector<8x128xf32> to vector<8x32xf32>
        %cst_49 = arith.constant 5.000000e-01 : f32
        %62 = vector.broadcast %cst_49 : f32 to vector<8x32xf32>
        %63 = arith.mulf %62, %61 : vector<8x32xf32>
        %cst_50 = arith.constant 5.000000e-01 : f32
        %64 = vector.broadcast %cst_50 : f32 to vector<8x32xf32>
        %65 = arith.addf %63, %64 : vector<8x32xf32>
        %66 = arith.mulf %59, %48 : vector<8x32xf32>
        %67 = arith.mulf %54, %60 : vector<8x32xf32>
        %68 = arith.addf %66, %67 : vector<8x32xf32>
        %69 = math.tanh %68 : vector<8x32xf32>
        %70 = arith.mulf %65, %69 : vector<8x32xf32>
        %c0_51 = arith.constant 0 : index
        %c0_52 = arith.constant 0 : index
        %71 = vector.load %arg15[%c0_51, %c0_52] : memref<8x32xf32, #tpu.memory_space<vmem>>, vector<8x32xf32>
        tpu.vector_store %arg15[%c0_51, %c0_52], %70 {strides = array<i32>} : memref<8x32xf32, #tpu.memory_space<vmem>>, vector<8x32xf32>,
        %c0_53 = arith.constant 0 : index
        %c0_54 = arith.constant 0 : index
        %72 = vector.load %arg16[%c0_53, %c0_54] : memref<8x32xf32, #tpu.memory_space<vmem>>, vector<8x32xf32>
        tpu.vector_store %arg16[%c0_53, %c0_54], %68 {strides = array<i32>} : memref<8x32xf32, #tpu.memory_space<vmem>>, vector<8x32xf32>,
        %cst_55 = arith.constant dense<0.000000e+00> : vector<8x128xf32>
        %73 = tpu.matmul %42, %23, %cst_55 {dimension_numbers = #tpu.dot_dimension_numbers<[1], [0], [0], [1], [0, 0, 1, 1], [], []>} : vector<8x32xf32>, vector<32x128xf32>, vector<8x128xf32> -> vector<8x128xf32>
        %74 = arith.addf %73, %26 : vector<8x128xf32>
        %cst_56 = arith.constant dense<0.000000e+00> : vector<8x128xf32>
        %75 = tpu.matmul %70, %22, %cst_56 {dimension_numbers = #tpu.dot_dimension_numbers<[1], [0], [0], [1], [0, 0, 1, 1], [], []>} : vector<8x32xf32>, vector<32x128xf32>, vector<8x128xf32> -> vector<8x128xf32>
        %76 = arith.addf %75, %74 : vector<8x128xf32>
        %c0_57 = arith.constant 0 : index
        %c0_58 = arith.constant 0 : index
        %77 = vector.load %arg18[%c0_57, %c0_58] : memref<8x32xf32, #tpu.memory_space<vmem>>, vector<8x32xf32>
        %78 = math.tanh %76 : vector<8x128xf32>
        %79 = vector.extract_strided_slice %78 {offsets = [0, 0], sizes = [8, 32], strides = [1, 1]} : vector<8x128xf32> to vector<8x32xf32>
        %cst_59 = arith.constant 5.000000e-01 : f32
        %80 = vector.broadcast %cst_59 : f32 to vector<8x32xf32>
        %81 = arith.mulf %80, %79 : vector<8x32xf32>
        %cst_60 = arith.constant 5.000000e-01 : f32
        %82 = vector.broadcast %cst_60 : f32 to vector<8x32xf32>
        %83 = arith.addf %81, %82 : vector<8x32xf32>
        %84 = vector.extract_strided_slice %78 {offsets = [0, 32], sizes = [8, 32], strides = [1, 1]} : vector<8x128xf32> to vector<8x32xf32>
        %cst_61 = arith.constant 5.000000e-01 : f32
        %85 = vector.broadcast %cst_61 : f32 to vector<8x32xf32>
        %86 = arith.mulf %85, %84 : vector<8x32xf32>
        %cst_62 = arith.constant 5.000000e-01 : f32
        %87 = vector.broadcast %cst_62 : f32 to vector<8x32xf32>
        %88 = arith.addf %86, %87 : vector<8x32xf32>
        %89 = vector.extract_strided_slice %78 {offsets = [0, 64], sizes = [8, 32], strides = [1, 1]} : vector<8x128xf32> to vector<8x32xf32>
        %90 = vector.extract_strided_slice %78 {offsets = [0, 96], sizes = [8, 32], strides = [1, 1]} : vector<8x128xf32> to vector<8x32xf32>
        %cst_63 = arith.constant 5.000000e-01 : f32
        %91 = vector.broadcast %cst_63 : f32 to vector<8x32xf32>
        %92 = arith.mulf %91, %90 : vector<8x32xf32>
        %cst_64 = arith.constant 5.000000e-01 : f32
        %93 = vector.broadcast %cst_64 : f32 to vector<8x32xf32>
        %94 = arith.addf %92, %93 : vector<8x32xf32>
        %95 = arith.mulf %88, %77 : vector<8x32xf32>
        %96 = arith.mulf %83, %89 : vector<8x32xf32>
        %97 = arith.addf %95, %96 : vector<8x32xf32>
        %98 = math.tanh %97 : vector<8x32xf32>
        %99 = arith.mulf %94, %98 : vector<8x32xf32>
        %c0_65 = arith.constant 0 : index
        %c0_66 = arith.constant 0 : index
        %100 = vector.load %arg17[%c0_65, %c0_66] : memref<8x32xf32, #tpu.memory_space<vmem>>, vector<8x32xf32>
        tpu.vector_store %arg17[%c0_65, %c0_66], %99 {strides = array<i32>} : memref<8x32xf32, #tpu.memory_space<vmem>>, vector<8x32xf32>,
        %c0_67 = arith.constant 0 : index
        %c0_68 = arith.constant 0 : index
        %101 = vector.load %arg18[%c0_67, %c0_68] : memref<8x32xf32, #tpu.memory_space<vmem>>, vector<8x32xf32>
        tpu.vector_store %arg18[%c0_67, %c0_68], %97 {strides = array<i32>} : memref<8x32xf32, #tpu.memory_space<vmem>>, vector<8x32xf32>,
        %102 = arith.addi %0, %40 : i32
        %103 = vector.broadcast %102 : i32 to vector<8x1xi32>
        %104 = arith.cmpi sgt, %27, %103 : vector<8x1xi32>
        %cst_69 = arith.constant 0.000000e+00 : f32
        %105 = vector.shape_cast %104 : vector<8x1xi1> to vector<8x1xi1>
        %106 = vector.broadcast %105 : vector<8x1xi1> to vector<8x32xi1>
        %107 = vector.broadcast %cst_69 : f32 to vector<8x32xf32>
        %108 = arith.select %106, %99, %107 : vector<8x32xi1>, vector<8x32xf32>
        %109 = arith.index_cast %40 : i32 to index
        %c0_70 = arith.constant 0 : index
        %c0_71 = arith.constant 0 : index
        %110 = vector.load %arg13[%109, %c0_70, %c0_71] : memref<8x8x32xf32, #tpu.memory_space<vmem>>, vector<1x8x32xf32>
        %111 = vector.shape_cast %110 : vector<1x8x32xf32> to vector<8x32xf32>
        %112 = vector.shape_cast %108 : vector<8x32xf32> to vector<1x8x32xf32>
        tpu.vector_store %arg13[%109, %c0_70, %c0_71], %112 {strides = array<i32>} : memref<8x8x32xf32, #tpu.memory_space<vmem>>, vector<1x8x32xf32>,
        %c1_i32_72 = arith.constant 1 : i32
        %113 = arith.addi %39, %c1_i32_72 : i32
        %c0_73 = arith.constant 0 : index
        %c0_74 = arith.constant 0 : index
        %114 = vector.load %arg15[%c0_73, %c0_74] : memref<8x32xf32, #tpu.memory_space<vmem>>, vector<8x32xf32>
        %c0_75 = arith.constant 0 : index
        %c0_76 = arith.constant 0 : index
        %115 = vector.load %arg17[%c0_75, %c0_76] : memref<8x32xf32, #tpu.memory_space<vmem>>, vector<8x32xf32>
        %116 = arith.index_cast %113 : i32 to index
        %c0_77 = arith.constant 0 : index
        %c0_78 = arith.constant 0 : index
        %117 = vector.load %arg19[%116, %c0_77, %c0_78] : memref<8x8x128xf32, #tpu.memory_space<vmem>>, vector<1x8x128xf32>
        %118 = vector.shape_cast %117 : vector<1x8x128xf32> to vector<8x128xf32>
        %cst_79 = arith.constant dense<0.000000e+00> : vector<8x128xf32>
        %119 = tpu.matmul %114, %21, %cst_79 {dimension_numbers = #tpu.dot_dimension_numbers<[1], [0], [0], [1], [0, 0, 1, 1], [], []>} : vector<8x32xf32>, vector<32x128xf32>, vector<8x128xf32> -> vector<8x128xf32>
        %120 = arith.addf %118, %119 : vector<8x128xf32>
        %c0_80 = arith.constant 0 : index
        %c0_81 = arith.constant 0 : index
        %121 = vector.load %arg16[%c0_80, %c0_81] : memref<8x32xf32, #tpu.memory_space<vmem>>, vector<8x32xf32>
        %122 = math.tanh %120 : vector<8x128xf32>
        %123 = vector.extract_strided_slice %122 {offsets = [0, 0], sizes = [8, 32], strides = [1, 1]} : vector<8x128xf32> to vector<8x32xf32>
        %cst_82 = arith.constant 5.000000e-01 : f32
        %124 = vector.broadcast %cst_82 : f32 to vector<8x32xf32>
        %125 = arith.mulf %124, %123 : vector<8x32xf32>
        %cst_83 = arith.constant 5.000000e-01 : f32
        %126 = vector.broadcast %cst_83 : f32 to vector<8x32xf32>
        %127 = arith.addf %125, %126 : vector<8x32xf32>
        %128 = vector.extract_strided_slice %122 {offsets = [0, 32], sizes = [8, 32], strides = [1, 1]} : vector<8x128xf32> to vector<8x32xf32>
        %cst_84 = arith.constant 5.000000e-01 : f32
        %129 = vector.broadcast %cst_84 : f32 to vector<8x32xf32>
        %130 = arith.mulf %129, %128 : vector<8x32xf32>
        %cst_85 = arith.constant 5.000000e-01 : f32
        %131 = vector.broadcast %cst_85 : f32 to vector<8x32xf32>
        %132 = arith.addf %130, %131 : vector<8x32xf32>
        %133 = vector.extract_strided_slice %122 {offsets = [0, 64], sizes = [8, 32], strides = [1, 1]} : vector<8x128xf32> to vector<8x32xf32>
        %134 = vector.extract_strided_slice %122 {offsets = [0, 96], sizes = [8, 32], strides = [1, 1]} : vector<8x128xf32> to vector<8x32xf32>
        %cst_86 = arith.constant 5.000000e-01 : f32
        %135 = vector.broadcast %cst_86 : f32 to vector<8x32xf32>
        %136 = arith.mulf %135, %134 : vector<8x32xf32>
        %cst_87 = arith.constant 5.000000e-01 : f32
        %137 = vector.broadcast %cst_87 : f32 to vector<8x32xf32>
        %138 = arith.addf %136, %137 : vector<8x32xf32>
        %139 = arith.mulf %132, %121 : vector<8x32xf32>
        %140 = arith.mulf %127, %133 : vector<8x32xf32>
        %141 = arith.addf %139, %140 : vector<8x32xf32>
        %142 = math.tanh %141 : vector<8x32xf32>
        %143 = arith.mulf %138, %142 : vector<8x32xf32>
        %c0_88 = arith.constant 0 : index
        %c0_89 = arith.constant 0 : index
        %144 = vector.load %arg15[%c0_88, %c0_89] : memref<8x32xf32, #tpu.memory_space<vmem>>, vector<8x32xf32>
        tpu.vector_store %arg15[%c0_88, %c0_89], %143 {strides = array<i32>} : memref<8x32xf32, #tpu.memory_space<vmem>>, vector<8x32xf32>,
        %c0_90 = arith.constant 0 : index
        %c0_91 = arith.constant 0 : index
        %145 = vector.load %arg16[%c0_90, %c0_91] : memref<8x32xf32, #tpu.memory_space<vmem>>, vector<8x32xf32>
        tpu.vector_store %arg16[%c0_90, %c0_91], %141 {strides = array<i32>} : memref<8x32xf32, #tpu.memory_space<vmem>>, vector<8x32xf32>,
        %cst_92 = arith.constant dense<0.000000e+00> : vector<8x128xf32>
        %146 = tpu.matmul %115, %23, %cst_92 {dimension_numbers = #tpu.dot_dimension_numbers<[1], [0], [0], [1], [0, 0, 1, 1], [], []>} : vector<8x32xf32>, vector<32x128xf32>, vector<8x128xf32> -> vector<8x128xf32>
        %147 = arith.addf %146, %26 : vector<8x128xf32>
        %cst_93 = arith.constant dense<0.000000e+00> : vector<8x128xf32>
        %148 = tpu.matmul %143, %22, %cst_93 {dimension_numbers = #tpu.dot_dimension_numbers<[1], [0], [0], [1], [0, 0, 1, 1], [], []>} : vector<8x32xf32>, vector<32x128xf32>, vector<8x128xf32> -> vector<8x128xf32>
        %149 = arith.addf %148, %147 : vector<8x128xf32>
        %c0_94 = arith.constant 0 : index
        %c0_95 = arith.constant 0 : index
        %150 = vector.load %arg18[%c0_94, %c0_95] : memref<8x32xf32, #tpu.memory_space<vmem>>, vector<8x32xf32>
        %151 = math.tanh %149 : vector<8x128xf32>
        %152 = vector.extract_strided_slice %151 {offsets = [0, 0], sizes = [8, 32], strides = [1, 1]} : vector<8x128xf32> to vector<8x32xf32>
        %cst_96 = arith.constant 5.000000e-01 : f32
        %153 = vector.broadcast %cst_96 : f32 to vector<8x32xf32>
        %154 = arith.mulf %153, %152 : vector<8x32xf32>
        %cst_97 = arith.constant 5.000000e-01 : f32
        %155 = vector.broadcast %cst_97 : f32 to vector<8x32xf32>
        %156 = arith.addf %154, %155 : vector<8x32xf32>
        %157 = vector.extract_strided_slice %151 {offsets = [0, 32], sizes = [8, 32], strides = [1, 1]} : vector<8x128xf32> to vector<8x32xf32>
        %cst_98 = arith.constant 5.000000e-01 : f32
        %158 = vector.broadcast %cst_98 : f32 to vector<8x32xf32>
        %159 = arith.mulf %158, %157 : vector<8x32xf32>
        %cst_99 = arith.constant 5.000000e-01 : f32
        %160 = vector.broadcast %cst_99 : f32 to vector<8x32xf32>
        %161 = arith.addf %159, %160 : vector<8x32xf32>
        %162 = vector.extract_strided_slice %151 {offsets = [0, 64], sizes = [8, 32], strides = [1, 1]} : vector<8x128xf32> to vector<8x32xf32>
        %163 = vector.extract_strided_slice %151 {offsets = [0, 96], sizes = [8, 32], strides = [1, 1]} : vector<8x128xf32> to vector<8x32xf32>
        %cst_100 = arith.constant 5.000000e-01 : f32
        %164 = vector.broadcast %cst_100 : f32 to vector<8x32xf32>
        %165 = arith.mulf %164, %163 : vector<8x32xf32>
        %cst_101 = arith.constant 5.000000e-01 : f32
        %166 = vector.broadcast %cst_101 : f32 to vector<8x32xf32>
        %167 = arith.addf %165, %166 : vector<8x32xf32>
        %168 = arith.mulf %161, %150 : vector<8x32xf32>
        %169 = arith.mulf %156, %162 : vector<8x32xf32>
        %170 = arith.addf %168, %169 : vector<8x32xf32>
        %171 = math.tanh %170 : vector<8x32xf32>
        %172 = arith.mulf %167, %171 : vector<8x32xf32>
        %c0_102 = arith.constant 0 : index
        %c0_103 = arith.constant 0 : index
        %173 = vector.load %arg17[%c0_102, %c0_103] : memref<8x32xf32, #tpu.memory_space<vmem>>, vector<8x32xf32>
        tpu.vector_store %arg17[%c0_102, %c0_103], %172 {strides = array<i32>} : memref<8x32xf32, #tpu.memory_space<vmem>>, vector<8x32xf32>,
        %c0_104 = arith.constant 0 : index
        %c0_105 = arith.constant 0 : index
        %174 = vector.load %arg18[%c0_104, %c0_105] : memref<8x32xf32, #tpu.memory_space<vmem>>, vector<8x32xf32>
        tpu.vector_store %arg18[%c0_104, %c0_105], %170 {strides = array<i32>} : memref<8x32xf32, #tpu.memory_space<vmem>>, vector<8x32xf32>,
        %175 = arith.addi %0, %113 : i32
        %176 = vector.broadcast %175 : i32 to vector<8x1xi32>
        %177 = arith.cmpi sgt, %27, %176 : vector<8x1xi32>
        %cst_106 = arith.constant 0.000000e+00 : f32
        %178 = vector.shape_cast %177 : vector<8x1xi1> to vector<8x1xi1>
        %179 = vector.broadcast %178 : vector<8x1xi1> to vector<8x32xi1>
        %180 = vector.broadcast %cst_106 : f32 to vector<8x32xf32>
        %181 = arith.select %179, %172, %180 : vector<8x32xi1>, vector<8x32xf32>
        %182 = arith.index_cast %113 : i32 to index
        %c0_107 = arith.constant 0 : index
        %c0_108 = arith.constant 0 : index
        %183 = vector.load %arg13[%182, %c0_107, %c0_108] : memref<8x8x32xf32, #tpu.memory_space<vmem>>, vector<1x8x32xf32>
        %184 = vector.shape_cast %183 : vector<1x8x32xf32> to vector<8x32xf32>
        %185 = vector.shape_cast %181 : vector<8x32xf32> to vector<1x8x32xf32>
        tpu.vector_store %arg13[%182, %c0_107, %c0_108], %185 {strides = array<i32>} : memref<8x8x32xf32, #tpu.memory_space<vmem>>, vector<1x8x32xf32>,
        %c2_i32_109 = arith.constant 2 : i32
        %186 = arith.addi %39, %c2_i32_109 : i32
        %c0_110 = arith.constant 0 : index
        %c0_111 = arith.constant 0 : index
        %187 = vector.load %arg15[%c0_110, %c0_111] : memref<8x32xf32, #tpu.memory_space<vmem>>, vector<8x32xf32>
        %c0_112 = arith.constant 0 : index
        %c0_113 = arith.constant 0 : index
        %188 = vector.load %arg17[%c0_112, %c0_113] : memref<8x32xf32, #tpu.memory_space<vmem>>, vector<8x32xf32>
        %189 = arith.index_cast %186 : i32 to index
        %c0_114 = arith.constant 0 : index
        %c0_115 = arith.constant 0 : index
        %190 = vector.load %arg19[%189, %c0_114, %c0_115] : memref<8x8x128xf32, #tpu.memory_space<vmem>>, vector<1x8x128xf32>
        %191 = vector.shape_cast %190 : vector<1x8x128xf32> to vector<8x128xf32>
        %cst_116 = arith.constant dense<0.000000e+00> : vector<8x128xf32>
        %192 = tpu.matmul %187, %21, %cst_116 {dimension_numbers = #tpu.dot_dimension_numbers<[1], [0], [0], [1], [0, 0, 1, 1], [], []>} : vector<8x32xf32>, vector<32x128xf32>, vector<8x128xf32> -> vector<8x128xf32>
        %193 = arith.addf %191, %192 : vector<8x128xf32>
        %c0_117 = arith.constant 0 : index
        %c0_118 = arith.constant 0 : index
        %194 = vector.load %arg16[%c0_117, %c0_118] : memref<8x32xf32, #tpu.memory_space<vmem>>, vector<8x32xf32>
        %195 = math.tanh %193 : vector<8x128xf32>
        %196 = vector.extract_strided_slice %195 {offsets = [0, 0], sizes = [8, 32], strides = [1, 1]} : vector<8x128xf32> to vector<8x32xf32>
        %cst_119 = arith.constant 5.000000e-01 : f32
        %197 = vector.broadcast %cst_119 : f32 to vector<8x32xf32>
        %198 = arith.mulf %197, %196 : vector<8x32xf32>
        %cst_120 = arith.constant 5.000000e-01 : f32
        %199 = vector.broadcast %cst_120 : f32 to vector<8x32xf32>
        %200 = arith.addf %198, %199 : vector<8x32xf32>
        %201 = vector.extract_strided_slice %195 {offsets = [0, 32], sizes = [8, 32], strides = [1, 1]} : vector<8x128xf32> to vector<8x32xf32>
        %cst_121 = arith.constant 5.000000e-01 : f32
        %202 = vector.broadcast %cst_121 : f32 to vector<8x32xf32>
        %203 = arith.mulf %202, %201 : vector<8x32xf32>
        %cst_122 = arith.constant 5.000000e-01 : f32
        %204 = vector.broadcast %cst_122 : f32 to vector<8x32xf32>
        %205 = arith.addf %203, %204 : vector<8x32xf32>
        %206 = vector.extract_strided_slice %195 {offsets = [0, 64], sizes = [8, 32], strides = [1, 1]} : vector<8x128xf32> to vector<8x32xf32>
        %207 = vector.extract_strided_slice %195 {offsets = [0, 96], sizes = [8, 32], strides = [1, 1]} : vector<8x128xf32> to vector<8x32xf32>
        %cst_123 = arith.constant 5.000000e-01 : f32
        %208 = vector.broadcast %cst_123 : f32 to vector<8x32xf32>
        %209 = arith.mulf %208, %207 : vector<8x32xf32>
        %cst_124 = arith.constant 5.000000e-01 : f32
        %210 = vector.broadcast %cst_124 : f32 to vector<8x32xf32>
        %211 = arith.addf %209, %210 : vector<8x32xf32>
        %212 = arith.mulf %205, %194 : vector<8x32xf32>
        %213 = arith.mulf %200, %206 : vector<8x32xf32>
        %214 = arith.addf %212, %213 : vector<8x32xf32>
        %215 = math.tanh %214 : vector<8x32xf32>
        %216 = arith.mulf %211, %215 : vector<8x32xf32>
        %c0_125 = arith.constant 0 : index
        %c0_126 = arith.constant 0 : index
        %217 = vector.load %arg15[%c0_125, %c0_126] : memref<8x32xf32, #tpu.memory_space<vmem>>, vector<8x32xf32>
        tpu.vector_store %arg15[%c0_125, %c0_126], %216 {strides = array<i32>} : memref<8x32xf32, #tpu.memory_space<vmem>>, vector<8x32xf32>,
        %c0_127 = arith.constant 0 : index
        %c0_128 = arith.constant 0 : index
        %218 = vector.load %arg16[%c0_127, %c0_128] : memref<8x32xf32, #tpu.memory_space<vmem>>, vector<8x32xf32>
        tpu.vector_store %arg16[%c0_127, %c0_128], %214 {strides = array<i32>} : memref<8x32xf32, #tpu.memory_space<vmem>>, vector<8x32xf32>,
        %cst_129 = arith.constant dense<0.000000e+00> : vector<8x128xf32>
        %219 = tpu.matmul %188, %23, %cst_129 {dimension_numbers = #tpu.dot_dimension_numbers<[1], [0], [0], [1], [0, 0, 1, 1], [], []>} : vector<8x32xf32>, vector<32x128xf32>, vector<8x128xf32> -> vector<8x128xf32>
        %220 = arith.addf %219, %26 : vector<8x128xf32>
        %cst_130 = arith.constant dense<0.000000e+00> : vector<8x128xf32>
        %221 = tpu.matmul %216, %22, %cst_130 {dimension_numbers = #tpu.dot_dimension_numbers<[1], [0], [0], [1], [0, 0, 1, 1], [], []>} : vector<8x32xf32>, vector<32x128xf32>, vector<8x128xf32> -> vector<8x128xf32>
        %222 = arith.addf %221, %220 : vector<8x128xf32>
        %c0_131 = arith.constant 0 : index
        %c0_132 = arith.constant 0 : index
        %223 = vector.load %arg18[%c0_131, %c0_132] : memref<8x32xf32, #tpu.memory_space<vmem>>, vector<8x32xf32>
        %224 = math.tanh %222 : vector<8x128xf32>
        %225 = vector.extract_strided_slice %224 {offsets = [0, 0], sizes = [8, 32], strides = [1, 1]} : vector<8x128xf32> to vector<8x32xf32>
        %cst_133 = arith.constant 5.000000e-01 : f32
        %226 = vector.broadcast %cst_133 : f32 to vector<8x32xf32>
        %227 = arith.mulf %226, %225 : vector<8x32xf32>
        %cst_134 = arith.constant 5.000000e-01 : f32
        %228 = vector.broadcast %cst_134 : f32 to vector<8x32xf32>
        %229 = arith.addf %227, %228 : vector<8x32xf32>
        %230 = vector.extract_strided_slice %224 {offsets = [0, 32], sizes = [8, 32], strides = [1, 1]} : vector<8x128xf32> to vector<8x32xf32>
        %cst_135 = arith.constant 5.000000e-01 : f32
        %231 = vector.broadcast %cst_135 : f32 to vector<8x32xf32>
        %232 = arith.mulf %231, %230 : vector<8x32xf32>
        %cst_136 = arith.constant 5.000000e-01 : f32
        %233 = vector.broadcast %cst_136 : f32 to vector<8x32xf32>
        %234 = arith.addf %232, %233 : vector<8x32xf32>
        %235 = vector.extract_strided_slice %224 {offsets = [0, 64], sizes = [8, 32], strides = [1, 1]} : vector<8x128xf32> to vector<8x32xf32>
        %236 = vector.extract_strided_slice %224 {offsets = [0, 96], sizes = [8, 32], strides = [1, 1]} : vector<8x128xf32> to vector<8x32xf32>
        %cst_137 = arith.constant 5.000000e-01 : f32
        %237 = vector.broadcast %cst_137 : f32 to vector<8x32xf32>
        %238 = arith.mulf %237, %236 : vector<8x32xf32>
        %cst_138 = arith.constant 5.000000e-01 : f32
        %239 = vector.broadcast %cst_138 : f32 to vector<8x32xf32>
        %240 = arith.addf %238, %239 : vector<8x32xf32>
        %241 = arith.mulf %234, %223 : vector<8x32xf32>
        %242 = arith.mulf %229, %235 : vector<8x32xf32>
        %243 = arith.addf %241, %242 : vector<8x32xf32>
        %244 = math.tanh %243 : vector<8x32xf32>
        %245 = arith.mulf %240, %244 : vector<8x32xf32>
        %c0_139 = arith.constant 0 : index
        %c0_140 = arith.constant 0 : index
        %246 = vector.load %arg17[%c0_139, %c0_140] : memref<8x32xf32, #tpu.memory_space<vmem>>, vector<8x32xf32>
        tpu.vector_store %arg17[%c0_139, %c0_140], %245 {strides = array<i32>} : memref<8x32xf32, #tpu.memory_space<vmem>>, vector<8x32xf32>,
        %c0_141 = arith.constant 0 : index
        %c0_142 = arith.constant 0 : index
        %247 = vector.load %arg18[%c0_141, %c0_142] : memref<8x32xf32, #tpu.memory_space<vmem>>, vector<8x32xf32>
        tpu.vector_store %arg18[%c0_141, %c0_142], %243 {strides = array<i32>} : memref<8x32xf32, #tpu.memory_space<vmem>>, vector<8x32xf32>,
        %248 = arith.addi %0, %186 : i32
        %249 = vector.broadcast %248 : i32 to vector<8x1xi32>
        %250 = arith.cmpi sgt, %27, %249 : vector<8x1xi32>
        %cst_143 = arith.constant 0.000000e+00 : f32
        %251 = vector.shape_cast %250 : vector<8x1xi1> to vector<8x1xi1>
        %252 = vector.broadcast %251 : vector<8x1xi1> to vector<8x32xi1>
        %253 = vector.broadcast %cst_143 : f32 to vector<8x32xf32>
        %254 = arith.select %252, %245, %253 : vector<8x32xi1>, vector<8x32xf32>
        %255 = arith.index_cast %186 : i32 to index
        %c0_144 = arith.constant 0 : index
        %c0_145 = arith.constant 0 : index
        %256 = vector.load %arg13[%255, %c0_144, %c0_145] : memref<8x8x32xf32, #tpu.memory_space<vmem>>, vector<1x8x32xf32>
        %257 = vector.shape_cast %256 : vector<1x8x32xf32> to vector<8x32xf32>
        %258 = vector.shape_cast %254 : vector<8x32xf32> to vector<1x8x32xf32>
        tpu.vector_store %arg13[%255, %c0_144, %c0_145], %258 {strides = array<i32>} : memref<8x8x32xf32, #tpu.memory_space<vmem>>, vector<1x8x32xf32>,
        %c3_i32 = arith.constant 3 : i32
        %259 = arith.addi %39, %c3_i32 : i32
        %c0_146 = arith.constant 0 : index
        %c0_147 = arith.constant 0 : index
        %260 = vector.load %arg15[%c0_146, %c0_147] : memref<8x32xf32, #tpu.memory_space<vmem>>, vector<8x32xf32>
        %c0_148 = arith.constant 0 : index
        %c0_149 = arith.constant 0 : index
        %261 = vector.load %arg17[%c0_148, %c0_149] : memref<8x32xf32, #tpu.memory_space<vmem>>, vector<8x32xf32>
        %262 = arith.index_cast %259 : i32 to index
        %c0_150 = arith.constant 0 : index
        %c0_151 = arith.constant 0 : index
        %263 = vector.load %arg19[%262, %c0_150, %c0_151] : memref<8x8x128xf32, #tpu.memory_space<vmem>>, vector<1x8x128xf32>
        %264 = vector.shape_cast %263 : vector<1x8x128xf32> to vector<8x128xf32>
        %cst_152 = arith.constant dense<0.000000e+00> : vector<8x128xf32>
        %265 = tpu.matmul %260, %21, %cst_152 {dimension_numbers = #tpu.dot_dimension_numbers<[1], [0], [0], [1], [0, 0, 1, 1], [], []>} : vector<8x32xf32>, vector<32x128xf32>, vector<8x128xf32> -> vector<8x128xf32>
        %266 = arith.addf %264, %265 : vector<8x128xf32>
        %c0_153 = arith.constant 0 : index
        %c0_154 = arith.constant 0 : index
        %267 = vector.load %arg16[%c0_153, %c0_154] : memref<8x32xf32, #tpu.memory_space<vmem>>, vector<8x32xf32>
        %268 = math.tanh %266 : vector<8x128xf32>
        %269 = vector.extract_strided_slice %268 {offsets = [0, 0], sizes = [8, 32], strides = [1, 1]} : vector<8x128xf32> to vector<8x32xf32>
        %cst_155 = arith.constant 5.000000e-01 : f32
        %270 = vector.broadcast %cst_155 : f32 to vector<8x32xf32>
        %271 = arith.mulf %270, %269 : vector<8x32xf32>
        %cst_156 = arith.constant 5.000000e-01 : f32
        %272 = vector.broadcast %cst_156 : f32 to vector<8x32xf32>
        %273 = arith.addf %271, %272 : vector<8x32xf32>
        %274 = vector.extract_strided_slice %268 {offsets = [0, 32], sizes = [8, 32], strides = [1, 1]} : vector<8x128xf32> to vector<8x32xf32>
        %cst_157 = arith.constant 5.000000e-01 : f32
        %275 = vector.broadcast %cst_157 : f32 to vector<8x32xf32>
        %276 = arith.mulf %275, %274 : vector<8x32xf32>
        %cst_158 = arith.constant 5.000000e-01 : f32
        %277 = vector.broadcast %cst_158 : f32 to vector<8x32xf32>
        %278 = arith.addf %276, %277 : vector<8x32xf32>
        %279 = vector.extract_strided_slice %268 {offsets = [0, 64], sizes = [8, 32], strides = [1, 1]} : vector<8x128xf32> to vector<8x32xf32>
        %280 = vector.extract_strided_slice %268 {offsets = [0, 96], sizes = [8, 32], strides = [1, 1]} : vector<8x128xf32> to vector<8x32xf32>
        %cst_159 = arith.constant 5.000000e-01 : f32
        %281 = vector.broadcast %cst_159 : f32 to vector<8x32xf32>
        %282 = arith.mulf %281, %280 : vector<8x32xf32>
        %cst_160 = arith.constant 5.000000e-01 : f32
        %283 = vector.broadcast %cst_160 : f32 to vector<8x32xf32>
        %284 = arith.addf %282, %283 : vector<8x32xf32>
        %285 = arith.mulf %278, %267 : vector<8x32xf32>
        %286 = arith.mulf %273, %279 : vector<8x32xf32>
        %287 = arith.addf %285, %286 : vector<8x32xf32>
        %288 = math.tanh %287 : vector<8x32xf32>
        %289 = arith.mulf %284, %288 : vector<8x32xf32>
        %c0_161 = arith.constant 0 : index
        %c0_162 = arith.constant 0 : index
        %290 = vector.load %arg15[%c0_161, %c0_162] : memref<8x32xf32, #tpu.memory_space<vmem>>, vector<8x32xf32>
        tpu.vector_store %arg15[%c0_161, %c0_162], %289 {strides = array<i32>} : memref<8x32xf32, #tpu.memory_space<vmem>>, vector<8x32xf32>,
        %c0_163 = arith.constant 0 : index
        %c0_164 = arith.constant 0 : index
        %291 = vector.load %arg16[%c0_163, %c0_164] : memref<8x32xf32, #tpu.memory_space<vmem>>, vector<8x32xf32>
        tpu.vector_store %arg16[%c0_163, %c0_164], %287 {strides = array<i32>} : memref<8x32xf32, #tpu.memory_space<vmem>>, vector<8x32xf32>,
        %cst_165 = arith.constant dense<0.000000e+00> : vector<8x128xf32>
        %292 = tpu.matmul %261, %23, %cst_165 {dimension_numbers = #tpu.dot_dimension_numbers<[1], [0], [0], [1], [0, 0, 1, 1], [], []>} : vector<8x32xf32>, vector<32x128xf32>, vector<8x128xf32> -> vector<8x128xf32>
        %293 = arith.addf %292, %26 : vector<8x128xf32>
        %cst_166 = arith.constant dense<0.000000e+00> : vector<8x128xf32>
        %294 = tpu.matmul %289, %22, %cst_166 {dimension_numbers = #tpu.dot_dimension_numbers<[1], [0], [0], [1], [0, 0, 1, 1], [], []>} : vector<8x32xf32>, vector<32x128xf32>, vector<8x128xf32> -> vector<8x128xf32>
        %295 = arith.addf %294, %293 : vector<8x128xf32>
        %c0_167 = arith.constant 0 : index
        %c0_168 = arith.constant 0 : index
        %296 = vector.load %arg18[%c0_167, %c0_168] : memref<8x32xf32, #tpu.memory_space<vmem>>, vector<8x32xf32>
        %297 = math.tanh %295 : vector<8x128xf32>
        %298 = vector.extract_strided_slice %297 {offsets = [0, 0], sizes = [8, 32], strides = [1, 1]} : vector<8x128xf32> to vector<8x32xf32>
        %cst_169 = arith.constant 5.000000e-01 : f32
        %299 = vector.broadcast %cst_169 : f32 to vector<8x32xf32>
        %300 = arith.mulf %299, %298 : vector<8x32xf32>
        %cst_170 = arith.constant 5.000000e-01 : f32
        %301 = vector.broadcast %cst_170 : f32 to vector<8x32xf32>
        %302 = arith.addf %300, %301 : vector<8x32xf32>
        %303 = vector.extract_strided_slice %297 {offsets = [0, 32], sizes = [8, 32], strides = [1, 1]} : vector<8x128xf32> to vector<8x32xf32>
        %cst_171 = arith.constant 5.000000e-01 : f32
        %304 = vector.broadcast %cst_171 : f32 to vector<8x32xf32>
        %305 = arith.mulf %304, %303 : vector<8x32xf32>
        %cst_172 = arith.constant 5.000000e-01 : f32
        %306 = vector.broadcast %cst_172 : f32 to vector<8x32xf32>
        %307 = arith.addf %305, %306 : vector<8x32xf32>
        %308 = vector.extract_strided_slice %297 {offsets = [0, 64], sizes = [8, 32], strides = [1, 1]} : vector<8x128xf32> to vector<8x32xf32>
        %309 = vector.extract_strided_slice %297 {offsets = [0, 96], sizes = [8, 32], strides = [1, 1]} : vector<8x128xf32> to vector<8x32xf32>
        %cst_173 = arith.constant 5.000000e-01 : f32
        %310 = vector.broadcast %cst_173 : f32 to vector<8x32xf32>
        %311 = arith.mulf %310, %309 : vector<8x32xf32>
        %cst_174 = arith.constant 5.000000e-01 : f32
        %312 = vector.broadcast %cst_174 : f32 to vector<8x32xf32>
        %313 = arith.addf %311, %312 : vector<8x32xf32>
        %314 = arith.mulf %307, %296 : vector<8x32xf32>
        %315 = arith.mulf %302, %308 : vector<8x32xf32>
        %316 = arith.addf %314, %315 : vector<8x32xf32>
        %317 = math.tanh %316 : vector<8x32xf32>
        %318 = arith.mulf %313, %317 : vector<8x32xf32>
        %c0_175 = arith.constant 0 : index
        %c0_176 = arith.constant 0 : index
        %319 = vector.load %arg17[%c0_175, %c0_176] : memref<8x32xf32, #tpu.memory_space<vmem>>, vector<8x32xf32>
        tpu.vector_store %arg17[%c0_175, %c0_176], %318 {strides = array<i32>} : memref<8x32xf32, #tpu.memory_space<vmem>>, vector<8x32xf32>,
        %c0_177 = arith.constant 0 : index
        %c0_178 = arith.constant 0 : index
        %320 = vector.load %arg18[%c0_177, %c0_178] : memref<8x32xf32, #tpu.memory_space<vmem>>, vector<8x32xf32>
        tpu.vector_store %arg18[%c0_177, %c0_178], %316 {strides = array<i32>} : memref<8x32xf32, #tpu.memory_space<vmem>>, vector<8x32xf32>,
        %321 = arith.addi %0, %259 : i32
        %322 = vector.broadcast %321 : i32 to vector<8x1xi32>
        %323 = arith.cmpi sgt, %27, %322 : vector<8x1xi32>
        %cst_179 = arith.constant 0.000000e+00 : f32
        %324 = vector.shape_cast %323 : vector<8x1xi1> to vector<8x1xi1>
        %325 = vector.broadcast %324 : vector<8x1xi1> to vector<8x32xi1>
        %326 = vector.broadcast %cst_179 : f32 to vector<8x32xf32>
        %327 = arith.select %325, %318, %326 : vector<8x32xi1>, vector<8x32xf32>
        %328 = arith.index_cast %259 : i32 to index
        %c0_180 = arith.constant 0 : index
        %c0_181 = arith.constant 0 : index
        %329 = vector.load %arg13[%328, %c0_180, %c0_181] : memref<8x8x32xf32, #tpu.memory_space<vmem>>, vector<1x8x32xf32>
        %330 = vector.shape_cast %329 : vector<1x8x32xf32> to vector<8x32xf32>
        %331 = vector.shape_cast %327 : vector<8x32xf32> to vector<1x8x32xf32>
        tpu.vector_store %arg13[%328, %c0_180, %c0_181], %331 {strides = array<i32>} : memref<8x8x32xf32, #tpu.memory_space<vmem>>, vector<1x8x32xf32>,
      }
      %c2_i32_23 = arith.constant 2 : i32
      %c0_24 = arith.constant 0 : index
      %c0_25 = arith.constant 0 : index
      %c0_26 = arith.constant 0 : index
      %29 = vector.load %arg13[%c0_24, %c0_25, %c0_26] : memref<8x8x32xf32, #tpu.memory_space<vmem>>, vector<8x8x32xf32>
      %30 = vector.shape_cast %29 : vector<8x8x32xf32> to vector<64x32xf32>
      %c0_27 = arith.constant 0 : index
      %c0_28 = arith.constant 0 : index
      %31 = vector.load %arg11[%c0_27, %c0_28] : memref<32x16xf32, #tpu.memory_space<vmem>>, vector<32x16xf32>
      %cst_29 = arith.constant dense<0.000000e+00> : vector<64x16xf32>
      %32 = tpu.matmul %30, %31, %cst_29 {dimension_numbers = #tpu.dot_dimension_numbers<[1], [0], [0], [1], [0, 0, 1, 1], [], []>} : vector<64x32xf32>, vector<32x16xf32>, vector<64x16xf32> -> vector<64x16xf32>
      %c0_30 = arith.constant 0 : index
      %c0_31 = arith.constant 0 : index
      %33 = vector.load %arg12[%c0_30, %c0_31] : memref<1x16xf32, #tpu.memory_space<vmem>>, vector<1x16xf32>
      %34 = vector.broadcast %33 : vector<1x16xf32> to vector<64x16xf32>
      %35 = arith.addf %32, %34 : vector<64x16xf32>
      %36 = vector.shape_cast %35 : vector<64x16xf32> to vector<8x8x16xf32>
      %c0_32 = arith.constant 0 : index
      %c0_33 = arith.constant 0 : index
      %c0_34 = arith.constant 0 : index
      %37 = vector.load %arg14[%c0_32, %c0_33, %c0_34] : memref<8x8x16xf32, #tpu.memory_space<vmem>>, vector<8x8x16xf32>
      tpu.vector_store %arg14[%c0_32, %c0_33, %c0_34], %36 {strides = array<i32>} : memref<8x8x16xf32, #tpu.memory_space<vmem>>, vector<8x8x16xf32>,
    } else {
    }
    return
  }
  func.func @transform_0(%arg0: i32, %arg1: i32, %arg2: memref<2xi32, #tpu.memory_space<smem>>) -> (i32, i32) {
    %c0_i32 = arith.constant 0 : i32
    %c0_i32_0 = arith.constant 0 : i32
    return %arg0, %c0_i32 : i32, i32
  }
  func.func @transform_1(%arg0: i32, %arg1: i32, %arg2: memref<2xi32, #tpu.memory_space<smem>>) -> (i32, i32, i32) {
    %c0_i32 = arith.constant 0 : i32
    %c0_i32_0 = arith.constant 0 : i32
    return %arg1, %arg0, %c0_i32 : i32, i32, i32
  }
  func.func @transform_2(%arg0: i32, %arg1: i32, %arg2: memref<2xi32, #tpu.memory_space<smem>>) -> (i32, i32) {
    %c0_i32 = arith.constant 0 : i32
    %c0_i32_0 = arith.constant 0 : i32
    %c0_i32_1 = arith.constant 0 : i32
    return %c0_i32, %c0_i32_0 : i32, i32
  }
  func.func @transform_3(%arg0: i32, %arg1: i32, %arg2: memref<2xi32, #tpu.memory_space<smem>>) -> (i32, i32) {
    %c0_i32 = arith.constant 0 : i32
    %c0_i32_0 = arith.constant 0 : i32
    %c0_i32_1 = arith.constant 0 : i32
    return %c0_i32, %c0_i32_0 : i32, i32
  }
  func.func @transform_4(%arg0: i32, %arg1: i32, %arg2: memref<2xi32, #tpu.memory_space<smem>>) -> (i32, i32) {
    %c0_i32 = arith.constant 0 : i32
    %c0_i32_0 = arith.constant 0 : i32
    %c0_i32_1 = arith.constant 0 : i32
    return %c0_i32, %c0_i32_0 : i32, i32
  }
  func.func @transform_5(%arg0: i32, %arg1: i32, %arg2: memref<2xi32, #tpu.memory_space<smem>>) -> (i32, i32) {
    %c0_i32 = arith.constant 0 : i32
    %c0_i32_0 = arith.constant 0 : i32
    %c0_i32_1 = arith.constant 0 : i32
    return %c0_i32, %c0_i32_0 : i32, i32
  }
  func.func @transform_6(%arg0: i32, %arg1: i32, %arg2: memref<2xi32, #tpu.memory_space<smem>>) -> (i32, i32) {
    %c0_i32 = arith.constant 0 : i32
    %c0_i32_0 = arith.constant 0 : i32
    %c0_i32_1 = arith.constant 0 : i32
    return %c0_i32, %c0_i32_0 : i32, i32
  }
  func.func @transform_7(%arg0: i32, %arg1: i32, %arg2: memref<2xi32, #tpu.memory_space<smem>>) -> (i32, i32) {
    %c0_i32 = arith.constant 0 : i32
    %c0_i32_0 = arith.constant 0 : i32
    %c0_i32_1 = arith.constant 0 : i32
    return %c0_i32, %c0_i32_0 : i32, i32
  }
  func.func @transform_8(%arg0: i32, %arg1: i32, %arg2: memref<2xi32, #tpu.memory_space<smem>>) -> (i32, i32) {
    %c0_i32 = arith.constant 0 : i32
    %c0_i32_0 = arith.constant 0 : i32
    %c0_i32_1 = arith.constant 0 : i32
    return %c0_i32, %c0_i32_0 : i32, i32
  }
  func.func @transform_9(%arg0: i32, %arg1: i32, %arg2: memref<2xi32, #tpu.memory_space<smem>>) -> (i32, i32) {
    %c0_i32 = arith.constant 0 : i32
    %c0_i32_0 = arith.constant 0 : i32
    %c0_i32_1 = arith.constant 0 : i32
    return %c0_i32, %c0_i32_0 : i32, i32
  }
  func.func @transform_10(%arg0: i32, %arg1: i32, %arg2: memref<2xi32, #tpu.memory_space<smem>>) -> (i32, i32, i32) {
    %c0_i32 = arith.constant 0 : i32
    %c0_i32_0 = arith.constant 0 : i32
    return %arg1, %arg0, %c0_i32 : i32, i32, i32
  }
  func.func @transform_11(%arg0: i32, %arg1: i32, %arg2: memref<2xi32, #tpu.memory_space<smem>>) -> (i32, i32, i32) {
    %c0_i32 = arith.constant 0 : i32
    %c0_i32_0 = arith.constant 0 : i32
    return %arg1, %arg0, %c0_i32 : i32, i32, i32
  }
}

</mosaic_0001>

<bundles_post_ra>
// kernel: uni_lstm_forward.1
= control target key start
LH: loop header
LB: loop body
LE: loop exit
PB: predicated region body
PF: predicated region fallthrough
CT: control target
= control target key end

     0   :  { %s3605_s0 = inlined_call_operand.vmem [shape: s32[2], index: 0, kind: input, shape index: {}]   ;;  %s3606_s1 = inlined_call_operand.vmem [shape: s32[16,1], index: 1, kind: input, shape index: {}]   ;;  %s3607_s2 = inlined_call_operand.vmem [shape: f32[16,16,16], index: 2, kind: input, shape index: {}]   ;;  %s3608_s3 = inlined_call_operand.vmem [shape: f32[16,128], index: 3, kind: input, shape index: {}]   ;;  %s3609_s4 = inlined_call_operand.vmem [shape: f32[32,128], index: 4, kind: input, shape index: {}]   ;;  %s3610_s5 = inlined_call_operand.vmem [shape: f32[1,128], index: 5, kind: input, shape index: {}]   ;;  %s3611_s6 = inlined_call_operand.vmem [shape: f32[32,128], index: 6, kind: input, shape index: {}]   ;;  %s3612_s7 = inlined_call_operand.vmem [shape: f32[32,128], index: 7, kind: input, shape index: {}]   ;;  %s3613_s8 = inlined_call_operand.vmem [shape: f32[1,128], index: 8, kind: input, shape index: {}]   ;;  %s3614_s9 = inlined_call_operand.vmem [shape: f32[32,16], index: 9, kind: input, shape index: {}]   ;;  %s3615_s10 = inlined_call_operand.vmem [shape: f32[1,16], index: 10, kind: input, shape index: {}]   ;;  %s3616_s11 = inlined_call_operand.vmem [shape: f32[16,16,32], index: 11, kind: output, shape index: {0}]   ;;  %s3617_s12 = inlined_call_operand.vmem [shape: f32[16,16,16], index: 12, kind: output, shape index: {1}]  }
   0x1   :  { %3619 = sst [smem:[#allocation14_spill]] %s3606_s1  ;;  %s18_s23 = sshll.u32 %s3605_s0, 4  ;;  %s19_s23 = int_to_ptr.vmem [resolvable:$true] %s18_s23 }
   0x2   :  { %3620 = sst [smem:[#allocation15_spill]] %s3607_s2  ;;  %s2873_s24 = scalar_lea.vmem %s19_s23, 16 }
   0x3   :  { %3621 = sst [smem:[#allocation16_spill]] %s3616_s11  ;;  %p2874_p0 = scmp.ne.s32.totalorder %s19_s23, %s2873_s24 }
   0x4   :  { %3622 = sst [smem:[#allocation17_spill]] %s3617_s12  ;;  %p2878_p1 = scmp.lt.s32.totalorder %s19_s23, %s19_s23 }
   0x5   :  { %p2879_p2 = scmp.lt.s32.totalorder %s2873_s24, %s2873_s24 }
   0x7   :  { %p2880_p3 = por %p2879_p2, %p2878_p1 }
   0x9   :  { %p2881_p4 = pnand %p2880_p3, %p2874_p0 }
   0xb   :  { %2884 = shalt.err (!%p2881_p4)  }
   0xc   :  { %s2951_s25 = smov [#allocation8]  }
   0xd   :  { %21 = dma.vmem_to_smem %s19_s23, 16, %s2951_s25, [#allocation7] }
   0xe   :  { %2917 = dma.done.wait [#allocation7], 16 }
   0xf   :  { %2918 = vsyncadd [#allocation7], 4294967280 }
  0x10   :  { %23 = sfence }
  0x11   :  { %s3028_s26 = smov 0   ;;  %s3030_s27 = smov 0  }
  0x12   :  { %s3032_s28 = smov 0   ;;  %s3034_s0 = smov 0  }
  0x13   :  { %s3036_s29 = smov 0   ;;  %s3038_s30 = smov 0  }
  0x14   :  { %s3040_s13 = smov 0  }
  0x15 LB: > { %s38_s14 = sadd.s32 1, %s2937_s29  ;;  %s41_s15 = sadd.s32 1, %s2941_s30  ;;  %s2945_s13 = sphi %s3040_s13, %s29_s13   ;;  %s2941_s30 = sphi %s3038_s30, %s3635_s30   ;;  %s2937_s29 = sphi %s3036_s29, %s3634_s29   ;;  %s2933_s0 = sphi %s3034_s0, %s3633_s0   ;;  %s2929_s28 = sphi %s3032_s28, %s3632_s28   ;;  %s2925_s27 = sphi %s3030_s27, %s3631_s27   ;;  %s2921_s26 = sphi %s3028_s26, %s3630_s26  }
  0x16   : > { %p39_p5 = scmp.ge.s32.totalorder %s38_s14, 2  ;;  %s2415_s16 = sadd.s32 4294967295, %s2945_s13  }
  0x17   : > { %p83_p6 = scmp.ne.s32.totalorder %s2925_s27, %s2921_s26  ;;  %p84_p7 = scmp.eq.s32.totalorder %s2945_s13, 0 }
  0x18   : > { %s3637_s14 = smov (%p39_p5, %s38_s14), 0  ;;  %s3639_s15 = smov (!%p39_p5, %s41_s15), %s2941_s30 }
  0x19   : > { %3623 = sst [smem:[#allocation13_spill]] %s3637_s14  ;;  %p43_p8 = scmp.ge.s32.totalorder %s3639_s15, 2 }
  0x1a   : > { %p283_p9 = scmp.eq.s32.totalorder %s2415_s16, 3  ;;  %s71_s17 = ssub.s32 %s2937_s29, %s3637_s14 }
  0x1b   : > { %p85_p10 = por %p84_p7, %p83_p6  ;;  %s3641_s15 = smov (%p43_p8, %s3639_s15), 0 }
  0x1c   : > { %p3076_p11 = por %p283_p9, %p83_p6  ;;  %s72_s19 = ssub.s32 %s2941_s30, %s3641_s15 }
  0x1d   : > { %s73_s20 = sor.u32 %s72_s19, %s71_s17  ;;  %s76_s21 = sadd.s32 1, %s2925_s27 }
  0x1e   : > { %p74_p12 = scmp.eq.s32.totalorder %s73_s20, 0  ;;  %p2418_p13 = scmp.ge.s32.totalorder %s2945_s13, 4 }
  0x20   : > { %s3084_s22 = scalar_select %p74_p12, %s2925_s27, %s76_s21  }
  0x21   : > { %357 = sbr.rel (%p2418_p13) target bundleno = 52 (0x34), region = 48 }
  0x26   : > { %367 = sbr.rel (!%p85_p10) target bundleno = 52 (0x34), region = 56  ;;  %s369_s23 = sand.u32 (%p85_p10), 1, %s2925_s27  }
  0x27   : > { %s2494_s24 = sshll.u32 (%p85_p10), %s2937_s29, 4  ;;  %s2419_s25 = sshll.u32 (%p85_p10), %s369_s23, 6 }
  0x28   : > { %s374_s16 = sadd.s32 (%p85_p10), %s2941_s30, %s2494_s24  ;;  %s3625_s2 = sld [smem:[#allocation15_spill]] (%p85_p10) }
  0x29   : > { %s2422_s14 = sshll.u32 (%p85_p10), %s374_s16, 3  ;;  %s371_s19 = scalar_lea.vmem (%p85_p10), [#allocation9], %s2419_s25 }
  0x2e   : > { %s376_s17 = scalar_lea.vmem %s3625_s2, %s2422_s14 }
  0x2f   : > { %v419_v0 = vld [vmem:[%s376_s17] sm:$0xff]  ;;  %v421_v1 = vld [vmem:[%s376_s17 + $0x10] sm:$0xff] }
  0x30   : > { %v423_v2 = vld [vmem:[%s376_s17 + $0x20] sm:$0xff]  ;;  %420 = vst [vmem:[%s371_s19] sm:$0xff] %v419_v0  ;;  %422 = vst [vmem:[%s371_s19 + $0x8] sm:$0xff] %v421_v1  ;;  %v425_v3 = vld [vmem:[%s376_s17 + $0x30] sm:$0xff] }
  0x31   : > { %424 = vst [vmem:[%s371_s19 + $0x10] sm:$0xff] %v423_v2  ;;  %v427_v4 = vld [vmem:[%s376_s17 + $0x40] sm:$0xff]  ;;  %v429_v5 = vld [vmem:[%s376_s17 + $0x50] sm:$0xff]  ;;  %426 = vst [vmem:[%s371_s19 + $0x18] sm:$0xff] %v425_v3 }
  0x32   : > { %428 = vst [vmem:[%s371_s19 + $0x20] sm:$0xff] %v427_v4  ;;  %430 = vst [vmem:[%s371_s19 + $0x28] sm:$0xff] %v429_v5  ;;  %v431_v6 = vld [vmem:[%s376_s17 + $0x60] sm:$0xff]  ;;  %v433_v7 = vld [vmem:[%s376_s17 + $0x70] sm:$0xff] }
  0x33   : > { %432 = vst [vmem:[%s371_s19 + $0x30] sm:$0xff] %v431_v6  ;;  %434 = vst [vmem:[%s371_s19 + $0x38] sm:$0xff] %v433_v7 }
  0x34 PF: > { %p2423_p0 = scmp.ge.s32.totalorder %s2945_s13, 1  ;;  %p439_p1 = scmp.lt.s32.totalorder %s2945_s13, 5 }
  0x36   : > { %p440_p2 = pnand %p2423_p0, %p439_p1 }
  0x37   : > { %s446_s11 = sand.u32 (!%p440_p2), 1, %s2921_s26   ;;  %p492_p3 = scmp.lt.s32.totalorder (!%p440_p2), %s2933_s0, 1 }
  0x38   : > { %443 = sbr.rel (%p440_p2) target bundleno = 4031 (0xfbf), region = 94  ;;  %s2424_s12 = sshll.u32 (!%p440_p2), %s446_s11, 6 }
  0x39   : > { %s3098_s14 = sshll.u32 (!%p440_p2), %s2929_s28, 3  ;;  %s3626_s1 = sld [smem:[#allocation14_spill]] (!%p440_p2) }
  0x3a   : > { %s3106_s16 = scalar_lea.vmem (!%p440_p2), [#allocation9], %s2424_s12  ;;  %s3108_s17 = scalar_lea.vmem (!%p440_p2), [#allocation10], %s2424_s12 }
  0x3b   : > { %s3110_s19 = scalar_lea.vmem (!%p440_p2), [#allocation11], %s2424_s12  ;;  %p2429_p4 = scmp.ne.s32.totalorder (!%p440_p2), %s2929_s28, 0 }
  0x3d   : > { %s493_s20 = scalar_select %p492_p3, %s2933_s0, 1 }
  0x3e   : > { %503 = sbr.rel (%p2429_p4) target bundleno = 70 (0x46), region = 102 }
  0x3f   : > { %s2427_s21 = sshll.u32 %s493_s20, 3 }
  0x40   : > { %s3104_s25 = scalar_lea.vmem %s3626_s1, %s2427_s21 }
  0x43   : > { %vm504_vm0 = vcmask 261120   ;;  %v2952_v8 = vmov 0.0  }
  0x44   : > { %505 = vst.msk [vmem:[#allocation2] sm:$0xff] %vm504_vm0, %v2952_v8  ;;  %506 = vst.msk [vmem:[#allocation3] sm:$0xff] %vm504_vm0, %v2952_v8 }
  0x45   : > { %507 = vst.msk [vmem:[#allocation4] sm:$0xff] %vm504_vm0, %v2952_v8  ;;  %508 = vst.msk [vmem:[#allocation5] sm:$0xff] %vm504_vm0, %v2952_v8 }
  0x46 PF: > { %s509_s26 = sld [smem:[#allocation8 + %s2933_s0]] }
  0x4c   : > { %p2430_p5 = scmp.lt.s32.totalorder %s3098_s14, %s509_s26 }
  0x4e   : > { %514 = sbr.rel (%p2430_p5) target bundleno = 92 (0x5c), region = 106 }
  0x53   : > { %vm515_vm1 = vcmask 261120   ;;  %v2431_v9 = vld [vmem:[%s3615_s10] ss:$0 sm:$0xff]  ;;  %vm531_vm2 = vcmask 130048   ;;  %v2953_v10 = vmov 0.0  }
  0x54   : > { %516 = vst.msk [vmem:[%s3108_s17] sm:$0xff] %vm515_vm1, %v2953_v10  ;;  %517 = vst.msk [vmem:[%s3108_s17 + $0x8] sm:$0xff] %vm515_vm1, %v2953_v10 }
  0x55   : > { %518 = vst.msk [vmem:[%s3108_s17 + $0x10] sm:$0xff] %vm515_vm1, %v2953_v10  ;;  %519 = vst.msk [vmem:[%s3108_s17 + $0x18] sm:$0xff] %vm515_vm1, %v2953_v10 }
  0x56   : > { %520 = vst.msk [vmem:[%s3108_s17 + $0x20] sm:$0xff] %vm515_vm1, %v2953_v10  ;;  %521 = vst.msk [vmem:[%s3108_s17 + $0x28] sm:$0xff] %vm515_vm1, %v2953_v10 }
  0x57   : > { %522 = vst.msk [vmem:[%s3108_s17 + $0x30] sm:$0xff] %vm515_vm1, %v2953_v10  ;;  %523 = vst.msk [vmem:[%s3108_s17 + $0x38] sm:$0xff] %vm515_vm1, %v2953_v10 }
  0x58   : > { %532 = vst.msk [vmem:[%s3110_s19] sm:$0xff] %vm531_vm2, %v2431_v9  ;;  %533 = vst.msk [vmem:[%s3110_s19 + $0x8] sm:$0xff] %vm531_vm2, %v2431_v9 }
  0x59   : > { %534 = vst.msk [vmem:[%s3110_s19 + $0x10] sm:$0xff] %vm531_vm2, %v2431_v9  ;;  %535 = vst.msk [vmem:[%s3110_s19 + $0x18] sm:$0xff] %vm531_vm2, %v2431_v9 }
  0x5a   : > { %536 = vst.msk [vmem:[%s3110_s19 + $0x20] sm:$0xff] %vm531_vm2, %v2431_v9  ;;  %537 = vst.msk [vmem:[%s3110_s19 + $0x28] sm:$0xff] %vm531_vm2, %v2431_v9 }
  0x5b   : > { %538 = vst.msk [vmem:[%s3110_s19 + $0x30] sm:$0xff] %vm531_vm2, %v2431_v9  ;;  %539 = vst.msk [vmem:[%s3110_s19 + $0x38] sm:$0xff] %vm531_vm2, %v2431_v9 }
  0x5c PF: > { %p2432_p6 = scmp.ge.s32.totalorder %s3098_s14, %s509_s26 }
  0x5e   : > { %542 = sbr.rel (%p2432_p6) target bundleno = 4007 (0xfa7), region = 110 }
  0x63   : > { %v552_v11 = vld [vmem:[%s3608_s3 + $0x8] sm:$0xff]  ;;  %v551_v12 = vld [vmem:[%s3608_s3] sm:$0xff]  ;;  %vm560_vm3 = vcmask 130048   ;;  %v545_v17 = vld [vmem:[%s3106_s16 + $0x10] sm:$0xff] }
  0x64   : > { %2586 = vmatprep.subr.mxu0 %v552_v11  ;;  %2754 = vmatprep.subr.mxu1 %v552_v11  ;;  %v543_v13 = vld [vmem:[%s3106_s16] sm:$0xff]  ;;  %v544_v15 = vld [vmem:[%s3106_s16 + $0x8] sm:$0xff]  ;;  %v549_v18 = vld [vmem:[%s3106_s16 + $0x30] sm:$0xff] }
  0x65   : > { %2587 = vmatpush3.msra.mxu0 %v552_v11  ;;  %2756 = vmatpush3.msra.mxu1 %v552_v11  ;;  %v547_v14 = vld [vmem:[%s3106_s16 + $0x20] sm:$0xff]  ;;  %v548_v16 = vld [vmem:[%s3106_s16 + $0x28] sm:$0xff]  ;;  %v546_v19 = vld [vmem:[%s3106_s16 + $0x18] sm:$0xff] }
  0x66   : > { %2588 = vmatprep.subr.mxu0 %v551_v12  ;;  %2755 = vmatprep.subr.mxu1 %v551_v12  ;;  %v550_v20 = vld [vmem:[%s3106_s16 + $0x38] sm:$0xff]  ;;  %v3168_v21 = vld [vmem:[%s3609_s4] sm:$0xff]  ;;  %v3173_v22 = vld [vmem:[%s3609_s4 + $0x8] sm:$0xff] }
  0x67   : > { %2589 = vmatpush3.msra.mxu0 %v551_v12  ;;  %2757 = vmatpush3.msra.mxu1 %v551_v12  ;;  %v3178_v23 = vld [vmem:[%s3609_s4 + $0x10] sm:$0xff]  ;;  %v3183_v24 = vld [vmem:[%s3609_s4 + $0x18] sm:$0xff]  ;;  %v3188_v25 = vld [vmem:[%s3611_s6] sm:$0xff] }
  0x68   : > { %2590 = vmatprep.mubr.msk.f32.mxu0 %vm560_vm3, %v543_v13  ;;  %2596 = vmatprep.mubr.msk.f32.mxu1 %vm560_vm3, %v547_v14  ;;  %v3193_v26 = vld [vmem:[%s3611_s6 + $0x8] sm:$0xff]  ;;  %v3198_v27 = vld [vmem:[%s3611_s6 + $0x10] sm:$0xff]  ;;  %v3203_v28 = vld [vmem:[%s3611_s6 + $0x18] sm:$0xff] }
  0x69   : > { %2591 = vmatmul.mubr.msk.f32.vlgmr.msra.gmra.mxu0 %vm560_vm3, %v544_v15  ;;  %2597 = vmatmul.mubr.msk.f32.vlgmr.msra.gmra.mxu1 %vm560_vm3, %v548_v16  ;;  %v3208_v29 = vld [vmem:[%s3612_s7] sm:$0xff]  ;;  %v3213_v30 = vld [vmem:[%s3612_s7 + $0x8] sm:$0xff]  ;;  %v3218_v31 = vld [vmem:[%s3612_s7 + $0x10] sm:$0xff] }
  0x6a   : > { %2593 = vmatprep.mubr.msk.f32.mxu0 %vm560_vm3, %v545_v17  ;;  %2599 = vmatprep.mubr.msk.f32.mxu1 %vm560_vm3, %v549_v18  ;;  %v3223_v32 = vld [vmem:[%s3612_s7 + $0x18] sm:$0xff]  ;;  %v3228_v33 = vld [vmem:[%s3613_s8] ss:$0 sm:$0xff] }
  0x6b   : > { %v3231_v34 = vld [vmem:[%s3104_s25] sm:$0xff]  ;;  %s3236_s25 = smov 0  }
  0x6c   : > { %v2433_v35 = vld [vmem:[%s3610_s5] ss:$0 sm:$0xff] }
  0x6d   : > { %2594 = vmatmul.mubr.msk.f32.gmra.mxu0 %vm560_vm3, %v546_v19  ;;  %2600 = vmatmul.mubr.msk.f32.gmra.mxu1 %vm560_vm3, %v550_v20 }
 0x129   : > { %v2592_v36 = vpop.f32.mrf.mxu0  ;;  %v2598_v37 = vpop.f32.mrf.mxu1 }
 0x12a   : > { %v657_v38 = vadd.f32 %v2592_v36, %v2433_v35  ;;  %v677_v39 = vadd.f32 %v2598_v37, %v2433_v35 }
 0x12b   : > { %v651_v40 = vpop.f32.mrf.mxu0  ;;  %v671_v41 = vpop.f32.mrf.mxu1 }
 0x12c   : > { %691 = vst [vmem:[#allocation6 + $0x8] sm:$0xff] %v657_v38  ;;  %695 = vst [vmem:[#allocation6 + $0x28] sm:$0xff] %v677_v39  ;;  %v652_v42 = vadd.f32 %v2433_v35, %v651_v40  ;;  %v672_v43 = vadd.f32 %v2433_v35, %v671_v41 }
 0x12d   : > { %v2595_v44 = vpop.f32.mrf.mxu0  ;;  %v2601_v45 = vpop.f32.mrf.mxu1 }
 0x12e   : > { %690 = vst [vmem:[#allocation6] sm:$0xff] %v652_v42  ;;  %694 = vst [vmem:[#allocation6 + $0x20] sm:$0xff] %v672_v43  ;;  %v667_v46 = vadd.f32 %v2595_v44, %v2433_v35  ;;  %v687_v47 = vadd.f32 %v2601_v45, %v2433_v35 }
 0x12f   : > { %v661_v48 = vpop.f32.mrf.mxu0  ;;  %v681_v49 = vpop.f32.mrf.mxu1 }
 0x130   : > { %693 = vst [vmem:[#allocation6 + $0x18] sm:$0xff] %v667_v46  ;;  %697 = vst [vmem:[#allocation6 + $0x38] sm:$0xff] %v687_v47  ;;  %v662_v50 = vadd.f32 %v2433_v35, %v661_v48  ;;  %v682_v51 = vadd.f32 %v2433_v35, %v681_v49 }
 0x132   : > { %692 = vst [vmem:[#allocation6 + $0x10] sm:$0xff] %v662_v50  ;;  %696 = vst [vmem:[#allocation6 + $0x30] sm:$0xff] %v682_v51 }
 0x133 LB: >> { %v2954_v52 = vmov 0.0   ;;  %vm2955_vm4 = vmmov 0   ;;  %v725_v53 = vld [vmem:[#allocation2] sm:$0xff]  ;;  %vm730_vm5 = vcmask 261120   ;;  %s2495_s1 = sshll.u32 %s2949_s25, 5  ;;  %s2956_s26 = smov 64   ;;  %s2949_s25 = sphi %s3236_s25, %s723_s25  }
 0x134   : >> { %2602 = vmatprep.subr.mxu0 %v2954_v52  ;;  %2610 = vmatprep.mubr.msk.f32.mxu0 %vm2955_vm4, %v2954_v52  ;;  %s3277_s2 = scalar_lea.vmem [#allocation6], %s2495_s1  ;;  %v805_v59 = vld [vmem:[#allocation3] sm:$0xff]  ;;  %s2957_s11 = smov 32   ;;  %v726_v4 = vld [vmem:[#allocation4] sm:$0xff]  ;;  %v985_v8 = vld [vmem:[#allocation5] sm:$0xff] }
 0x135   : >> { %2603 = vmatpush3.msra.mxu0 %v3183_v24  ;;  %2613 = vmatprep.subr.mxu1 %v2954_v52  ;;  %s2958_s20 = smov 96   ;;  %s3450_s12 = sshll.u32 %s2949_s25, 2 }
 0x136   : >> { %2604 = vmatprep.subr.mxu0 %v2954_v52  ;;  %2614 = vmatpush3.msra.mxu1 %v3223_v32  ;;  %s1020_s21 = sadd.s32 %s3450_s12, %s3098_s14  ;;  %s1655_s23 = sadd.s32 3, %s3450_s12 }
 0x137   : >> { %2605 = vmatpush3.msra.mxu0 %v3178_v23  ;;  %2615 = vmatprep.subr.mxu1 %v2954_v52  ;;  %s1950_s16 = sadd.s32 %s3098_s14, %s1655_s23  ;;  %s3472_s24 = scalar_lea.vmem %s3108_s17, %s2495_s1 [#allocation10] }
 0x138   : >> { %2606 = vmatprep.subr.mxu0 %v2954_v52  ;;  %2616 = vmatpush3.msra.mxu1 %v3218_v31  ;;  %s1345_s23 = sadd.s32 2, %s3450_s12  ;;  %s723_s25 = sadd.s32 1, %s2949_s25  }
 0x139   : >> { %2607 = vmatpush3.msra.mxu0 %v3173_v22  ;;  %2617 = vmatprep.subr.mxu1 %v2954_v52  ;;  %v729_v54 = vld [vmem:[%s3277_s2] sm:$0xff]  ;;  %v2450_v19 = vld [vmem:[%s3277_s2 + $0x8] sm:$0xff]  ;;  %p720_p7 = scmp.ge.s32.totalorder %s723_s25, 2  }
 0x13a   : >> { %2608 = vmatprep.subr.mxu0 %v2954_v52  ;;  %2618 = vmatpush3.msra.mxu1 %v3213_v30 }
 0x13b   : >> { %2609 = vmatpush3.msra.mxu0 %v3168_v21  ;;  %2619 = vmatprep.subr.mxu1 %v2954_v52 }
 0x13c   : >> { %2611 = vmatmul.mubr.msk.f32.vlgmr.msra.gmra.mxu0 %vm730_vm5, %v725_v53  ;;  %2624 = vmatprep.subr.mxu0 %v2954_v52 }
 0x13d   : >> { %2625 = vmatpush3.msra.mxu0 %v3203_v28  ;;  %2620 = vmatpush3.msra.mxu1 %v3208_v29 }
 0x13e   : >> { %2626 = vmatprep.subr.mxu0 %v2954_v52  ;;  %2621 = vmatprep.mubr.msk.f32.mxu1 %vm2955_vm4, %v2954_v52 }
 0x13f   : >> { %2627 = vmatpush3.msra.mxu0 %v3198_v27  ;;  %2632 = vmatprep.mubr.msk.f32.mxu0 %vm2955_vm4, %v2954_v52 }
 0x140   : >> { %2628 = vmatprep.subr.mxu0 %v2954_v52  ;;  %2635 = vmatprep.subr.mxu1 %v2954_v52 }
 0x141   : >> { %2629 = vmatpush3.msra.mxu0 %v3193_v26  ;;  %2622 = vmatmul.mubr.msk.f32.vlgmr.msra.gmra.mxu1 %vm730_vm5, %v726_v4 }
 0x142   : >> { %2630 = vmatprep.subr.mxu0 %v2954_v52  ;;  %2636 = vmatpush3.msra.mxu1 %v3183_v24 }
 0x143   : >> { %2631 = vmatpush3.msra.mxu0 %v3188_v25  ;;  %2643 = vmatprep.mubr.msk.f32.mxu1 %vm2955_vm4, %v2954_v52 }
 0x144   : >> { %2646 = vmatprep.subr.mxu0 %v2954_v52  ;;  %2637 = vmatprep.subr.mxu1 %v2954_v52 }
 0x145   : >> { %2638 = vmatpush3.msra.mxu1 %v3178_v23 }
 0x146   : >> { %2639 = vmatprep.subr.mxu1 %v2954_v52 }
 0x147   : >> { %2640 = vmatpush3.msra.mxu1 %v3173_v22 }
 0x148   : >> { %2641 = vmatprep.subr.mxu1 %v2954_v52 }
 0x149   : >> { %2642 = vmatpush3.msra.mxu1 %v3168_v21 }
 0x14a   : >> { %2657 = vmatprep.subr.mxu1 %v2954_v52 }
 0x1fc   : >> { %v800_v55 = vpop.f32.mrf.mxu0 }
 0x1fd   : >> { %v804_v56 = vadd.f32 %v800_v55, %v729_v54 }
 0x1fe   : >> { %v2612_v57 = vpop.f32.mrf.mxu0 }
 0x1ff   : >> { %2841 = vtanh.f32 %v804_v56 }
 0x201   : >> { %v909_v9 = vpop.f32.mrf.mxu1 }
 0x202   : >> { %v910_v15 = vadd.f32 %v3228_v33, %v909_v9 }
 0x203   : >> { %v2623_v11 = vpop.f32.mrf.mxu1 }
 0x20c   : >> { %v2842_v58 = vpop.eup %2841 }
 0x20d   : >> { %815 = vrot.lane.b32.xlu0 %v2842_v58, %s2956_s26  ;;  %v807_v60 = vmul.f32 0.5, %v2842_v58 }
 0x20f   : >> { %v808_v61 = vadd.f32 0.5, %v807_v60 }
 0x211   : >> { %810 = vrot.lane.b32.xlu0 %v805_v59, %s2957_s11 }
 0x27f   : >> { %v816_v62 = vpop.permute.xlu0 %815 }
 0x280   : >> { %v818_v63 = vmul.f32 %v816_v62, %v808_v61 }
 0x282   : >> { %820 = vrot.lane.b32.xlu1 %v818_v63, %s2957_s11 }
 0x283   : >> { %v811_v0 = vpop.permute.xlu0 %810 }
 0x284   : >> { %v813_v1 = vmul.f32 %v811_v0, %v808_v61 }
 0x2f4   : >> { %v821_v2 = vpop.permute.xlu1 %820 }
 0x2f5   : >> { %v823_v3 = vadd.f32 %v821_v2, %v813_v1 }
 0x2f7   : >> { %2843 = vtanh.f32 %v823_v3 }
 0x304   : >> { %v2844_v5 = vpop.eup %2843 }
 0x305   : >> { %826 = vrot.lane.b32.xlu1 %v2844_v5, %s2956_s26 }
 0x377   : >> { %v827_v6 = vpop.permute.xlu1 %826 }
 0x378   : >> { %v829_v7 = vmul.f32 %v827_v6, %v808_v61 }
 0x37a   : >> { %831 = vrot.lane.b32.xlu0 %v829_v7, %s2957_s11 }
 0x37e   : >> { %836 = vrot.lane.b32.xlu0 %v823_v3, %s2958_s20 }
 0x382   : >> { %990 = vrot.lane.b32.xlu0 %v985_v8, %s2957_s11 }
 0x3ec   : >> { %v832_v10 = vpop.permute.xlu0 %831 }
 0x3ed   : >> { %834 = vst.msk [vmem:[#allocation2] sm:$0xff] %vm730_vm5, %v832_v10  ;;  %2633 = vmatmul.mubr.msk.f32.vlgmr.msra.gmra.mxu0 %vm730_vm5, %v832_v10 }
 0x3ee   : >> { %2647 = vmatpush3.msra.mxu0 %v3223_v32  ;;  %2654 = vmatprep.mubr.msk.f32.mxu0 %vm2955_vm4, %v2954_v52 }
 0x3ef   : >> { %2648 = vmatprep.subr.mxu0 %v2954_v52 }
 0x3f0   : >> { %v837_v12 = vpop.permute.xlu0 %836  ;;  %2649 = vmatpush3.msra.mxu0 %v3218_v31 }
 0x3f1   : >> { %839 = vst.msk [vmem:[#allocation3] sm:$0xff] %vm730_vm5, %v837_v12  ;;  %2650 = vmatprep.subr.mxu0 %v2954_v52  ;;  %v2459_v12 = vld [vmem:[%s3277_s2 + $0x10] sm:$0xff] }
 0x3f2   : >> { %2651 = vmatpush3.msra.mxu0 %v3213_v30 }
 0x3f3   : >> { %2652 = vmatprep.subr.mxu0 %v2954_v52 }
 0x3f4   : >> { %v1036_v13 = vld [vmem:[#allocation2] sm:$0xff]  ;;  %2653 = vmatpush3.msra.mxu0 %v3208_v29  ;;  %v991_v47 = vpop.permute.xlu0 %990 }
 0x3f5   : >> { %2644 = vmatmul.mubr.msk.f32.vlgmr.msra.gmra.mxu1 %vm730_vm5, %v1036_v13  ;;  %2668 = vmatprep.subr.mxu0 %v2954_v52 }
 0x3f6   : >> { %2658 = vmatpush3.msra.mxu1 %v3203_v28  ;;  %2665 = vmatprep.mubr.msk.f32.mxu1 %vm2955_vm4, %v2954_v52 }
 0x3f7   : >> { %2659 = vmatprep.subr.mxu1 %v2954_v52 }
 0x3f8   : >> { %v1115_v14 = vld [vmem:[#allocation3] sm:$0xff]  ;;  %2660 = vmatpush3.msra.mxu1 %v3198_v27 }
 0x3f9   : >> { %1120 = vrot.lane.b32.xlu0 %v1115_v14, %s2957_s11  ;;  %2661 = vmatprep.subr.mxu1 %v2954_v52 }
 0x3fa   : >> { %2662 = vmatpush3.msra.mxu1 %v3193_v26 }
 0x3fb   : >> { %2663 = vmatprep.subr.mxu1 %v2954_v52 }
 0x3fc   : >> { %2664 = vmatpush3.msra.mxu1 %v3188_v25 }
 0x3fd   : >> { %2679 = vmatprep.subr.mxu1 %v2954_v52 }
 0x46b   : >> { %v1121_v51 = vpop.permute.xlu0 %1120 }
 0x4ad   : >> { %v981_v16 = vpop.f32.mrf.mxu0 }
 0x4ae   : >> { %v982_v17 = vadd.f32 %v981_v16, %v910_v15 }
 0x4af   : >> { %v2634_v18 = vpop.f32.mrf.mxu0 }
 0x4b0   : >> { %2845 = vtanh.f32 %v982_v17 }
 0x4b5   : >> { %v1110_v20 = vpop.f32.mrf.mxu1 }
 0x4b6   : >> { %v1114_v35 = vadd.f32 %v2450_v19, %v1110_v20 }
 0x4b7   : >> { %v2645_v36 = vpop.f32.mrf.mxu1 }
 0x4b8   : >> { %2847 = vtanh.f32 %v1114_v35 }
 0x4bd   : >> { %v2846_v37 = vpop.eup %2845 }
 0x4be   : >> { %995 = vrot.lane.b32.xlu1 %v2846_v37, %s2956_s26  ;;  %v987_v39 = vmul.f32 0.5, %v2846_v37 }
 0x4c0   : >> { %v988_v40 = vadd.f32 0.5, %v987_v39 }
 0x4c2   : >> { %v993_v48 = vmul.f32 %v991_v47, %v988_v40 }
 0x4c5   : >> { %v2848_v38 = vpop.eup %2847 }
 0x4c6   : >> { %1125 = vrot.lane.b32.xlu1 %v2848_v38, %s2956_s26  ;;  %v1117_v43 = vmul.f32 0.5, %v2848_v38 }
 0x4c8   : >> { %v1118_v44 = vadd.f32 0.5, %v1117_v43 }
 0x4ca   : >> { %v1123_v53 = vmul.f32 %v1121_v51, %v1118_v44 }
 0x530   : >> { %v996_v41 = vpop.permute.xlu1 %995 }
 0x531   : >> { %v998_v42 = vmul.f32 %v996_v41, %v988_v40 }
 0x533   : >> { %1000 = vrot.lane.b32.xlu1 %v998_v42, %s2957_s11 }
 0x538   : >> { %v1126_v45 = vpop.permute.xlu1 %1125 }
 0x539   : >> { %v1128_v46 = vmul.f32 %v1126_v45, %v1118_v44 }
 0x53b   : >> { %1130 = vrot.lane.b32.xlu1 %v1128_v46, %s2957_s11 }
 0x5a5   : >> { %v1001_v49 = vpop.permute.xlu1 %1000 }
 0x5a6   : >> { %v1003_v50 = vadd.f32 %v1001_v49, %v993_v48 }
 0x5a8   : >> { %2849 = vtanh.f32 %v1003_v50 }
 0x5ad   : >> { %v1131_v54 = vpop.permute.xlu1 %1130 }
 0x5ae   : >> { %v1133_v55 = vadd.f32 %v1131_v54, %v1123_v53 }
 0x5b0   : >> { %2851 = vtanh.f32 %v1133_v55 }
 0x5b5   : >> { %v2850_v56 = vpop.eup %2849 }
 0x5b6   : >> { %1006 = vrot.lane.b32.xlu0 %v2850_v56, %s2956_s26 }
 0x5bd   : >> { %v2852_v57 = vpop.eup %2851 }
 0x5be   : >> { %1136 = vrot.lane.b32.xlu1 %v2852_v57, %s2956_s26 }
 0x628   : >> { %v1007_v58 = vpop.permute.xlu0 %1006 }
 0x629   : >> { %v3331_v59 = vmul.f32 %v1007_v58, %v988_v40 }
 0x62b   : >> { %1011 = vrot.lane.b32.xlu0 %v3331_v59, %s2957_s11 }
 0x62f   : >> { %1016 = vrot.lane.b32.xlu0 %v1003_v50, %s2958_s20 }
 0x630   : >> { %v1137_v60 = vpop.permute.xlu1 %1136 }
 0x631   : >> { %v1139_v61 = vmul.f32 %v1137_v60, %v1118_v44 }
 0x633   : >> { %1141 = vrot.lane.b32.xlu1 %v1139_v61, %s2957_s11  ;;  %1146 = vrot.lane.b32.xlu0 %v1133_v55, %s2958_s20 }
 0x69d   : >> { %v1012_v62 = vpop.permute.xlu0 %1011 }
 0x69e   : >> { %1014 = vst.msk [vmem:[#allocation4] sm:$0xff] %vm730_vm5, %v1012_v62 }
 0x6a1   : >> { %v1017_v63 = vpop.permute.xlu0 %1016 }
 0x6a2   : >> { %1019 = vst.msk [vmem:[#allocation5] sm:$0xff] %vm730_vm5, %v1017_v63 }
 0x6a5   : >> { %v1142_v0 = vpop.permute.xlu1 %1141  ;;  %v1147_v1 = vpop.permute.xlu0 %1146  ;;  %v1037_v2 = vld [vmem:[#allocation4] sm:$0xff] }
 0x6a6   : >> { %1144 = vst.msk [vmem:[#allocation2] sm:$0xff] %vm730_vm5, %v1142_v0  ;;  %1149 = vst.msk [vmem:[#allocation3] sm:$0xff] %vm730_vm5, %v1147_v1  ;;  %2655 = vmatmul.mubr.msk.f32.vlgmr.msra.gmra.mxu0 %vm730_vm5, %v1037_v2  ;;  %2666 = vmatmul.mubr.msk.f32.vlgmr.msra.gmra.mxu1 %vm730_vm5, %v1142_v0 }
 0x6a7   : >> { %2669 = vmatpush3.msra.mxu0 %v3183_v24  ;;  %2676 = vmatprep.mubr.msk.f32.mxu0 %vm2955_vm4, %v2954_v52 }
 0x6a8   : >> { %2670 = vmatprep.subr.mxu0 %v2954_v52  ;;  %2680 = vmatpush3.msra.mxu1 %v3223_v32 }
 0x6a9   : >> { %2671 = vmatpush3.msra.mxu0 %v3178_v23  ;;  %v1295_v3 = vld [vmem:[#allocation5] sm:$0xff]  ;;  %2681 = vmatprep.subr.mxu1 %v2954_v52 }
 0x6aa   : >> { %2672 = vmatprep.subr.mxu0 %v2954_v52  ;;  %1300 = vrot.lane.b32.xlu0 %v1295_v3, %s2957_s11 }
 0x6ab   : >> { %2673 = vmatpush3.msra.mxu0 %v3173_v22  ;;  %2682 = vmatpush3.msra.mxu1 %v3218_v31 }
 0x6ac   : >> { %2674 = vmatprep.subr.mxu0 %v2954_v52  ;;  %2683 = vmatprep.subr.mxu1 %v2954_v52 }
 0x6ad   : >> { %2675 = vmatpush3.msra.mxu0 %v3168_v21  ;;  %v1346_v4 = vld [vmem:[#allocation2] sm:$0xff]  ;;  %v1425_v5 = vld [vmem:[#allocation3] sm:$0xff]  ;;  %2684 = vmatpush3.msra.mxu1 %v3213_v30 }
 0x6ae   : >> { %2677 = vmatmul.mubr.msk.f32.vlgmr.msra.gmra.mxu0 %vm730_vm5, %v1346_v4  ;;  %1430 = vrot.lane.b32.xlu0 %v1425_v5, %s2957_s11 }
 0x6af   : >> { %2690 = vmatprep.subr.mxu0 %v2954_v52  ;;  %2685 = vmatprep.subr.mxu1 %v2954_v52 }
 0x6b0   : >> { %2691 = vmatpush3.msra.mxu0 %v3203_v28  ;;  %2698 = vmatprep.mubr.msk.f32.mxu0 %vm2955_vm4, %v2954_v52 }
 0x6b1   : >> { %2692 = vmatprep.subr.mxu0 %v2954_v52  ;;  %2686 = vmatpush3.msra.mxu1 %v3208_v29 }
 0x6b2   : >> { %2693 = vmatpush3.msra.mxu0 %v3198_v27  ;;  %2687 = vmatprep.mubr.msk.f32.mxu1 %vm2955_vm4, %v2954_v52 }
 0x6b3   : >> { %2694 = vmatprep.subr.mxu0 %v2954_v52  ;;  %2701 = vmatprep.subr.mxu1 %v2954_v52 }
 0x6b4   : >> { %2695 = vmatpush3.msra.mxu0 %v3193_v26 }
 0x6b5   : >> { %2696 = vmatprep.subr.mxu0 %v2954_v52 }
 0x6b6   : >> { %2697 = vmatpush3.msra.mxu0 %v3188_v25 }
 0x6b7   : >> { %2712 = vmatprep.subr.mxu0 %v2954_v52 }
 0x71c   : >> { %v1301_v40 = vpop.permute.xlu0 %1300 }
 0x720   : >> { %v1431_v44 = vpop.permute.xlu0 %1430 }
 0x766   : >> { %v1219_v6 = vpop.f32.mrf.mxu0  ;;  %v1291_v7 = vpop.f32.mrf.mxu1 }
 0x767   : >> { %v1220_v8 = vadd.f32 %v3228_v33, %v1219_v6  ;;  %v2468_v6 = vld [vmem:[%s3277_s2 + $0x18] sm:$0xff]  ;;  %s1035_s2 = sadd.s32 1, %s3450_s12 }
 0x768   : >> { %v2656_v9 = vpop.f32.mrf.mxu0  ;;  %v2667_v10 = vpop.f32.mrf.mxu1 }
 0x769   : >> { %v1292_v11 = vadd.f32 %v1291_v7, %v1220_v8 }
 0x76b   : >> { %2853 = vtanh.f32 %v1292_v11 }
 0x76e   : >> { %v1420_v13 = vpop.f32.mrf.mxu0 }
 0x76f   : >> { %v1424_v14 = vadd.f32 %v2459_v12, %v1420_v13 }
 0x770   : >> { %v2678_v15 = vpop.f32.mrf.mxu0 }
 0x771   : >> { %2855 = vtanh.f32 %v1424_v14 }
 0x778   : >> { %v2854_v16 = vpop.eup %2853 }
 0x779   : >> { %1305 = vrot.lane.b32.xlu1 %v2854_v16, %s2956_s26  ;;  %v1297_v18 = vmul.f32 0.5, %v2854_v16 }
 0x77b   : >> { %v1298_v19 = vadd.f32 0.5, %v1297_v18 }
 0x77d   : >> { %v1303_v41 = vmul.f32 %v1301_v40, %v1298_v19 }
 0x77e   : >> { %v2856_v17 = vpop.eup %2855 }
 0x77f   : >> { %1435 = vrot.lane.b32.xlu1 %v2856_v17, %s2956_s26  ;;  %v1427_v36 = vmul.f32 0.5, %v2856_v17 }
 0x781   : >> { %v1428_v37 = vadd.f32 0.5, %v1427_v36 }
 0x783   : >> { %v1433_v45 = vmul.f32 %v1431_v44, %v1428_v37 }
 0x7eb   : >> { %v1306_v20 = vpop.permute.xlu1 %1305 }
 0x7ec   : >> { %v1308_v35 = vmul.f32 %v1306_v20, %v1298_v19 }
 0x7ee   : >> { %1310 = vrot.lane.b32.xlu1 %v1308_v35, %s2957_s11 }
 0x7f1   : >> { %v1436_v38 = vpop.permute.xlu1 %1435 }
 0x7f2   : >> { %v1438_v39 = vmul.f32 %v1436_v38, %v1428_v37 }
 0x7f4   : >> { %1440 = vrot.lane.b32.xlu1 %v1438_v39, %s2957_s11 }
 0x860   : >> { %v1311_v42 = vpop.permute.xlu1 %1310 }
 0x861   : >> { %v1313_v43 = vadd.f32 %v1311_v42, %v1303_v41 }
 0x863   : >> { %2857 = vtanh.f32 %v1313_v43 }
 0x866   : >> { %v1441_v46 = vpop.permute.xlu1 %1440 }
 0x867   : >> { %v1443_v47 = vadd.f32 %v1441_v46, %v1433_v45  ;;  %v2959_v45 = vmov 0  }
 0x868   : >> { %2840 = vset.pattern.permute.xlu1 %v2959_v45  ;;  %2839 = vset.pattern.permute.xlu0 %v2959_v45 }
 0x869   : >> { %2859 = vtanh.f32 %v1443_v47 }
 0x870   : >> { %v2858_v48 = vpop.eup %2857 }
 0x871   : >> { %1316 = vrot.lane.b32.xlu0 %v2858_v48, %s2956_s26 }
 0x876   : >> { %v2860_v49 = vpop.eup %2859 }
 0x877   : >> { %1446 = vrot.lane.b32.xlu1 %v2860_v49, %s2956_s26 }
 0x8e3   : >> { %v1317_v50 = vpop.permute.xlu0 %1316 }
 0x8e4   : >> { %v3385_v51 = vmul.f32 %v1317_v50, %v1298_v19 }
 0x8e6   : >> { %1321 = vrot.lane.b32.xlu0 %v3385_v51, %s2957_s11 }
 0x8e9   : >> { %v1447_v53 = vpop.permute.xlu1 %1446 }
 0x8ea   : >> { %v1449_v54 = vmul.f32 %v1447_v53, %v1428_v37  ;;  %1326 = vrot.lane.b32.xlu0 %v1313_v43, %s2958_s20 }
 0x8ec   : >> { %1451 = vrot.lane.b32.xlu1 %v1449_v54, %s2957_s11  ;;  %v1021_v54 = vstv %s1020_s21  ;;  %s1330_s21 = sadd.s32 %s3098_s14, %s1035_s2 }
 0x8ed   : >> { %vm1022_vm6 = vcmp.gt.s32.totalorder %v3231_v34, %v1021_v54 }
 0x8ee   : >> { %1456 = vrot.lane.b32.xlu0 %v1443_v47, %s2958_s20 }
 0x958   : >> { %v1322_v55 = vpop.permute.xlu0 %1321 }
 0x959   : >> { %1324 = vst.msk [vmem:[#allocation4] sm:$0xff] %vm730_vm5, %v1322_v55 }
 0x95c   : >> { %v1327_v56 = vpop.permute.xlu0 %1326 }
 0x95d   : >> { %1329 = vst.msk [vmem:[#allocation5] sm:$0xff] %vm730_vm5, %v1327_v56  ;;  %v1951_v56 = vstv %s1950_s16  ;;  %s1640_s16 = sadd.s32 %s3098_s14, %s1345_s23 }
 0x95e   : >> { %v1452_v57 = vpop.permute.xlu1 %1451  ;;  %vm1952_vm7 = vcmp.gt.s32.totalorder %v3231_v34, %v1951_v56 }
 0x95f   : >> { %1454 = vst.msk [vmem:[#allocation2] sm:$0xff] %vm730_vm5, %v1452_v57  ;;  %2699 = vmatmul.mubr.msk.f32.vlgmr.msra.gmra.mxu0 %vm730_vm5, %v1452_v57  ;;  %v1023_v57 = vsel %vm1022_vm6, 1, %v2959_v45 }
 0x960   : >> { %v1457_v58 = vpop.permute.xlu0 %1456  ;;  %v1347_v60 = vld [vmem:[#allocation4] sm:$0xff]  ;;  %2713 = vmatpush3.msra.mxu0 %v3223_v32  ;;  %2720 = vmatprep.mubr.msk.f32.mxu0 %vm2955_vm4, %v2954_v52 }
 0x961   : >> { %1459 = vst.msk [vmem:[#allocation3] sm:$0xff] %vm730_vm5, %v1457_v58  ;;  %2688 = vmatmul.mubr.msk.f32.vlgmr.msra.gmra.mxu1 %vm730_vm5, %v1347_v60  ;;  %2714 = vmatprep.subr.mxu0 %v2954_v52  ;;  %v1953_v58 = vsel %vm1952_vm7, 1, %v2959_v45 }
 0x962   : >> { %2702 = vmatpush3.msra.mxu1 %v3183_v24  ;;  %2709 = vmatprep.mubr.msk.f32.mxu1 %vm2955_vm4, %v2954_v52 }
 0x963   : >> { %2703 = vmatprep.subr.mxu1 %v2954_v52  ;;  %2715 = vmatpush3.msra.mxu0 %v3218_v31 }
 0x964   : >> { %2704 = vmatpush3.msra.mxu1 %v3178_v23  ;;  %v1605_v61 = vld [vmem:[#allocation5] sm:$0xff]  ;;  %2716 = vmatprep.subr.mxu0 %v2954_v52 }
 0x965   : >> { %2705 = vmatprep.subr.mxu1 %v2954_v52  ;;  %1610 = vrot.lane.b32.xlu0 %v1605_v61, %s2957_s11 }
 0x966   : >> { %2706 = vmatpush3.msra.mxu1 %v3173_v22  ;;  %v1656_v62 = vld [vmem:[#allocation2] sm:$0xff]  ;;  %2717 = vmatpush3.msra.mxu0 %v3213_v30 }
 0x967   : >> { %2707 = vmatprep.subr.mxu1 %v2954_v52  ;;  %2718 = vmatprep.subr.mxu0 %v2954_v52  ;;  %v2475_v30 = vld [vmem:[%s3615_s10] ss:$0 sm:$0xff] (%p720_p7) }
 0x968   : >> { %2708 = vmatpush3.msra.mxu1 %v3168_v21  ;;  %v1735_v63 = vld [vmem:[#allocation3] sm:$0xff]  ;;  %2719 = vmatpush3.msra.mxu0 %v3208_v29  ;;  %v1973_v21 = vld [vmem:[%s3614_s9] sm:$0xff] (%p720_p7) }
 0x969   : >> { %2710 = vmatmul.mubr.msk.f32.vlgmr.msra.gmra.mxu1 %vm730_vm5, %v1656_v62  ;;  %1740 = vrot.lane.b32.xlu0 %v1735_v63, %s2957_s11 }
 0x96a   : >> { %2723 = vmatprep.subr.mxu1 %v2954_v52  ;;  %2731 = vmatprep.mubr.msk.f32.mxu1 %vm2955_vm4, %v2954_v52 }
 0x96b   : >> { %2724 = vmatpush3.msra.mxu1 %v3203_v28 }
 0x96c   : >> { %2725 = vmatprep.subr.mxu1 %v2954_v52 }
 0x96d   : >> { %2726 = vmatpush3.msra.mxu1 %v3198_v27 }
 0x96e   : >> { %2727 = vmatprep.subr.mxu1 %v2954_v52 }
 0x96f   : >> { %2728 = vmatpush3.msra.mxu1 %v3193_v26 }
 0x970   : >> { %2729 = vmatprep.subr.mxu1 %v2954_v52 }
 0x971   : >> { %2730 = vmatpush3.msra.mxu1 %v3188_v25 }
 0x9d7   : >> { %v1611_v19 = vpop.permute.xlu0 %1610 }
 0x9db   : >> { %v1741_v37 = vpop.permute.xlu0 %1740 }
 0xa1f   : >> { %v1601_v0 = vpop.f32.mrf.mxu0 }
 0xa21   : >> { %v1529_v1 = vpop.f32.mrf.mxu1  ;;  %v2700_v2 = vpop.f32.mrf.mxu0 }
 0xa22   : >> { %v1530_v3 = vadd.f32 %v3228_v33, %v1529_v1 }
 0xa23   : >> { %v2689_v4 = vpop.f32.mrf.mxu1 }
 0xa24   : >> { %v1602_v5 = vadd.f32 %v1601_v0, %v1530_v3 }
 0xa26   : >> { %2861 = vtanh.f32 %v1602_v5 }
 0xa29   : >> { %v1730_v7 = vpop.f32.mrf.mxu1 }
 0xa2a   : >> { %v1734_v8 = vadd.f32 %v2468_v6, %v1730_v7 }
 0xa2b   : >> { %v2711_v9 = vpop.f32.mrf.mxu1 }
 0xa2c   : >> { %2863 = vtanh.f32 %v1734_v8  ;;  %v1331_v8 = vstv %s1330_s21 }
 0xa2d   : >> { %vm1332_vm9 = vcmp.gt.s32.totalorder %v3231_v34, %v1331_v8 }
 0xa33   : >> { %v2862_v10 = vpop.eup %2861 }
 0xa34   : >> { %1615 = vrot.lane.b32.xlu1 %v2862_v10, %s2956_s26  ;;  %v1607_v52 = vmul.f32 0.5, %v2862_v10 }
 0xa36   : >> { %v1608_v12 = vadd.f32 0.5, %v1607_v52  ;;  %v1641_v52 = vstv %s1640_s16 }
 0xa37   : >> { %vm1642_vm10 = vcmp.gt.s32.totalorder %v3231_v34, %v1641_v52 }
 0xa38   : >> { %v1613_v20 = vmul.f32 %v1611_v19, %v1608_v12 }
 0xa39   : >> { %v2864_v11 = vpop.eup %2863 }
 0xa3a   : >> { %1745 = vrot.lane.b32.xlu1 %v2864_v11, %s2956_s26  ;;  %v1737_v15 = vmul.f32 0.5, %v2864_v11 }
 0xa3c   : >> { %v1738_v16 = vadd.f32 0.5, %v1737_v15 }
 0xa3e   : >> { %v1743_v38 = vmul.f32 %v1741_v37, %v1738_v16 }
 0xaa6   : >> { %v1616_v13 = vpop.permute.xlu1 %1615 }
 0xaa7   : >> { %v1618_v14 = vmul.f32 %v1616_v13, %v1608_v12  ;;  %v1643_v13 = vsel %vm1642_vm10, 1, %v2959_v45 }
 0xaa9   : >> { %1620 = vrot.lane.b32.xlu1 %v1618_v14, %s2957_s11 }
 0xaac   : >> { %v1746_v17 = vpop.permute.xlu1 %1745 }
 0xaad   : >> { %v1748_v18 = vmul.f32 %v1746_v17, %v1738_v16 }
 0xaaf   : >> { %1750 = vrot.lane.b32.xlu1 %v1748_v18, %s2957_s11 }
 0xb1b   : >> { %v1621_v35 = vpop.permute.xlu1 %1620 }
 0xb1c   : >> { %v1623_v36 = vadd.f32 %v1621_v35, %v1613_v20 }
 0xb1e   : >> { %2865 = vtanh.f32 %v1623_v36 }
 0xb21   : >> { %v1751_v39 = vpop.permute.xlu1 %1750 }
 0xb22   : >> { %v3435_v40 = vadd.f32 %v1751_v39, %v1743_v38 }
 0xb24   : >> { %2867 = vtanh.f32 %v3435_v40 }
 0xb2b   : >> { %v2866_v41 = vpop.eup %2865 }
 0xb2c   : >> { %1626 = vrot.lane.b32.xlu0 %v2866_v41, %s2956_s26 }
 0xb31   : >> { %v2868_v42 = vpop.eup %2867 }
 0xb32   : >> { %1756 = vrot.lane.b32.xlu1 %v2868_v42, %s2956_s26 }
 0xb9e   : >> { %v1627_v43 = vpop.permute.xlu0 %1626 }
 0xb9f   : >> { %v3440_v44 = vmul.f32 %v1627_v43, %v1608_v12  ;;  %v1333_v12 = vsel %vm1332_vm9, 1, %v2959_v45  ;;  %v1975_v45 = vld [vmem:[%s3614_s9 + $0x10] sm:$0xff] (%p720_p7) }
 0xba1   : >> { %1631 = vrot.lane.b32.xlu0 %v3440_v44, %s2957_s11 }
 0xba4   : >> { %v1757_v46 = vpop.permute.xlu1 %1756 }
 0xba5   : >> { %v1759_v47 = vmul.f32 %v1757_v46, %v1738_v16  ;;  %1636 = vrot.lane.b32.xlu0 %v1623_v36, %s2958_s20  ;;  %v1974_v46 = vld [vmem:[%s3614_s9 + $0x8] sm:$0xff] (%p720_p7) }
 0xba7   : >> { %1761 = vrot.lane.b32.xlu1 %v1759_v47, %s2957_s11 }
 0xc13   : >> { %v1632_v48 = vpop.permute.xlu0 %1631 }
 0xc14   : >> { %1634 = vst.msk [vmem:[#allocation4] sm:$0xff] %vm730_vm5, %v1632_v48 }
 0xc17   : >> { %v1637_v49 = vpop.permute.xlu0 %1636 }
 0xc18   : >> { %1639 = vst.msk [vmem:[#allocation5] sm:$0xff] %vm730_vm5, %v1637_v49 }
 0xc19   : >> { %v1762_v50 = vpop.permute.xlu1 %1761 }
 0xc1a   : >> { %1764 = vst.msk [vmem:[#allocation2] sm:$0xff] %vm730_vm5, %v1762_v50  ;;  %2732 = vmatmul.mubr.msk.f32.vlgmr.msra.gmra.mxu1 %vm730_vm5, %v1762_v50 }
 0xc1b   : >> { %v1657_v53 = vld [vmem:[#allocation4] sm:$0xff] }
 0xc1c   : >> { %2721 = vmatmul.mubr.msk.f32.vlgmr.msra.gmra.mxu0 %vm730_vm5, %v1657_v53 }
 0xc1f   : >> { %v1915_v55 = vld [vmem:[#allocation5] sm:$0xff] }
 0xc20   : >> { %1920 = vrot.lane.b32.xlu0 %v1915_v55, %s2957_s11 }
 0xc24   : >> { %1025 = vperm.xlu0 %2839, %v1023_v57  }
 0xc28   : >> { %1955 = vperm.xlu0 %2839, %v1953_v58  }
 0xc92   : >> { %v1921_v60 = vpop.permute.xlu0 %1920 }
 0xc9f   : >> { %v1026_v61 = vpop.permute.xlu0 %1025 }
 0xca0   : >> { %vm1027_vm8 = vcmp.eq.s32.totalorder %v1026_v61, 1 }
 0xca1   : >> { %v1028_v62 = vsel %vm1027_vm8, %v3331_v59, 0.0 }
 0xca2   : >> { %1030 = vrot.lane.b32.xlu0 %v1028_v62, %s2957_s11 }
 0xca3   : >> { %v1956_v6 = vpop.permute.xlu0 %1955 }
 0xca4   : >> { %vm1957_vm13 = vcmp.eq.s32.totalorder %v1956_v6, 1 }
 0xcda   : >> { %v1911_v63 = vpop.f32.mrf.mxu1 }
 0xcdc   : >> { %v2733_v0 = vpop.f32.mrf.mxu1  ;;  %v1839_v1 = vpop.f32.mrf.mxu0 }
 0xcdd   : >> { %v1840_v2 = vadd.f32 %v3228_v33, %v1839_v1 }
 0xcde   : >> { %v2722_v3 = vpop.f32.mrf.mxu0 }
 0xcdf   : >> { %v1912_v4 = vadd.f32 %v1911_v63, %v1840_v2 }
 0xce1   : >> { %2869 = vtanh.f32 %v1912_v4 }
 0xcee   : >> { %v2870_v5 = vpop.eup %2869 }
 0xcef   : >> { %1925 = vrot.lane.b32.xlu1 %v2870_v5, %s2956_s26  ;;  %v1917_v7 = vmul.f32 0.5, %v2870_v5 }
 0xcf1   : >> { %v1918_v9 = vadd.f32 0.5, %v1917_v7 }
 0xcf3   : >> { %v1923_v14 = vmul.f32 %v1921_v60, %v1918_v9 }
 0xd14   : >> { %v1031_v59 = vpop.permute.xlu0 %1030 }
 0xd15   : >> { %1034 = vst.msk [vmem:[%s3472_s24] sm:$0xff] %vm730_vm5, %v1031_v59 }
 0xd61   : >> { %v1926_v10 = vpop.permute.xlu1 %1925 }
 0xd62   : >> { %v1928_v11 = vmul.f32 %v1926_v10, %v1918_v9 }
 0xd64   : >> { %1930 = vrot.lane.b32.xlu1 %v1928_v11, %s2957_s11 }
 0xd68   : >> { %1335 = vperm.xlu1 %2840, %v1333_v12  }
 0xd6c   : >> { %1645 = vperm.xlu1 %2840, %v1643_v13  }
 0xdd6   : >> { %v1931_v15 = vpop.permute.xlu1 %1930 }
 0xdd7   : >> { %v1933_v16 = vadd.f32 %v1931_v15, %v1923_v14 }
 0xdd9   : >> { %2871 = vtanh.f32 %v1933_v16 }
 0xde3   : >> { %v1336_v17 = vpop.permute.xlu1 %1335 }
 0xde4   : >> { %vm1337_vm11 = vcmp.eq.s32.totalorder %v1336_v17, 1 }
 0xde5   : >> { %v1338_v35 = vsel %vm1337_vm11, %v3385_v51, 0.0 }
 0xde6   : >> { %v2872_v18 = vpop.eup %2871 }
 0xde7   : >> { %1936 = vrot.lane.b32.xlu1 %v2872_v18, %s2956_s26  ;;  %v1646_v19 = vpop.permute.xlu1 %1645 }
 0xde8   : >> { %vm1647_vm12 = vcmp.eq.s32.totalorder %v1646_v19, 1 }
 0xde9   : >> { %v1648_v20 = vsel %vm1647_vm12, %v3440_v44, 0.0  ;;  %v1976_v44 = vld [vmem:[%s3614_s9 + $0x18] sm:$0xff] (%p720_p7) }
 0xdea   : >> { %1650 = vrot.lane.b32.xlu0 %v1648_v20, %s2957_s11  ;;  %2734 = vmatprep.subr.mxu0 (%p720_p7), %v1976_v44 }
 0xdeb   : >> { %1340 = vrot.lane.b32.xlu1 %v1338_v35, %s2957_s11  ;;  %2758 = vmatprep.subr.mxu1 (%p720_p7), %v1976_v44 }
 0xdec   : > { %2735 = vmatpush3.msra.mxu0 (%p720_p7), %v1976_v44  ;;  %2762 = vmatpush3.msra.mxu1 (%p720_p7), %v1976_v44 }
 0xded   : > { %2736 = vmatprep.subr.mxu0 (%p720_p7), %v1975_v45  ;;  %2759 = vmatprep.subr.mxu1 (%p720_p7), %v1975_v45 }
 0xdee   : > { %2737 = vmatpush3.msra.mxu0 (%p720_p7), %v1975_v45  ;;  %2763 = vmatpush3.msra.mxu1 (%p720_p7), %v1975_v45 }
 0xdef   : >> { %1766 = vrot.lane.b32.xlu1 %v3435_v40, %s2958_s20  ;;  %2738 = vmatprep.subr.mxu0 (%p720_p7), %v1974_v46 }
 0xdf0   : > { %2760 = vmatprep.subr.mxu1 (%p720_p7), %v1974_v46  ;;  %2739 = vmatpush3.msra.mxu0 (%p720_p7), %v1974_v46 }
 0xdf1   : > { %2764 = vmatpush3.msra.mxu1 (%p720_p7), %v1974_v46  ;;  %2740 = vmatprep.subr.mxu0 (%p720_p7), %v1973_v21 }
 0xdf2   : > { %2761 = vmatprep.subr.mxu1 (%p720_p7), %v1973_v21  ;;  %2741 = vmatpush3.msra.mxu0 (%p720_p7), %v1973_v21 }
 0xdf3   : >> { %1946 = vrot.lane.b32.xlu1 %v1933_v16, %s2958_s20  ;;  %2765 = vmatpush3.msra.mxu1 (%p720_p7), %v1973_v21 }
 0xe59   : >> { %v1937_v36 = vpop.permute.xlu1 %1936 }
 0xe5a   : >> { %v1939_v37 = vmul.f32 %v1937_v36, %v1918_v9 }
 0xe5c   : >> { %1941 = vrot.lane.b32.xlu0 %v1939_v37, %s2957_s11  ;;  %v1651_v38 = vpop.permute.xlu0 %1650  ;;  %v1958_v51 = vsel %vm1957_vm13, %v1939_v37, 0.0 }
 0xe5d   : >> { %2465 = vst.msk [vmem:[%s3472_s24 + $0x10] sm:$0xff] %vm730_vm5, %v1651_v38  ;;  %v1341_v39 = vpop.permute.xlu1 %1340 }
 0xe5e   : >> { %2456 = vst.msk [vmem:[%s3472_s24 + $0x8] sm:$0xff] %vm730_vm5, %v1341_v39 }
 0xe60   : >> { %1960 = vrot.lane.b32.xlu0 %v1958_v51, %s2957_s11 }
 0xe61   : >> { %v1767_v41 = vpop.permute.xlu1 %1766 }
 0xe62   : >> { %1769 = vst.msk [vmem:[#allocation3] sm:$0xff] %vm730_vm5, %v1767_v41 }
 0xe65   : >> { %v1947_v40 = vpop.permute.xlu1 %1946 }
 0xe66   : >> { %1949 = vst.msk [vmem:[#allocation5] sm:$0xff] %vm730_vm5, %v1947_v40 }
 0xece   : >> { %v1942_v42 = vpop.permute.xlu0 %1941 }
 0xecf   : >> { %1944 = vst.msk [vmem:[#allocation4] sm:$0xff] %vm730_vm5, %v1942_v42 }
 0xed2   : >> { %v1961_v43 = vpop.permute.xlu0 %1960 }
 0xed3   : >> { %2474 = vst.msk [vmem:[%s3472_s24 + $0x18] sm:$0xff] %vm730_vm5, %v1961_v43  ;;  %722 = sbr.rel (!%p720_p7) target bundleno = 307 (0x133), region = 251 }
 0xeda   : > { %v1965_v22 = vld [vmem:[%s3108_s17] sm:$0xff]  ;;  %v1966_v24 = vld [vmem:[%s3108_s17 + $0x8] sm:$0xff]  ;;  %v1967_v26 = vld [vmem:[%s3108_s17 + $0x10] sm:$0xff] }
 0xedb   : > { %v1969_v23 = vld [vmem:[%s3108_s17 + $0x20] sm:$0xff]  ;;  %v1970_v25 = vld [vmem:[%s3108_s17 + $0x28] sm:$0xff]  ;;  %v1971_v27 = vld [vmem:[%s3108_s17 + $0x30] sm:$0xff]  ;;  %2742 = vmatprep.mubr.msk.f32.mxu0 %vm730_vm5, %v1965_v22 }
 0xedc   : > { %2748 = vmatprep.mubr.msk.f32.mxu1 %vm730_vm5, %v1969_v23  ;;  %2743 = vmatmul.mubr.msk.f32.vlgmr.msra.gmra.mxu0 %vm730_vm5, %v1966_v24  ;;  %v1968_v28 = vld [vmem:[%s3108_s17 + $0x18] sm:$0xff] }
 0xedd   : > { %2749 = vmatmul.mubr.msk.f32.vlgmr.msra.gmra.mxu1 %vm730_vm5, %v1970_v25  ;;  %2745 = vmatprep.mubr.msk.f32.mxu0 %vm730_vm5, %v1967_v26  ;;  %v1972_v29 = vld [vmem:[%s3108_s17 + $0x38] sm:$0xff] }
 0xede   : > { %2751 = vmatprep.mubr.msk.f32.mxu1 %vm730_vm5, %v1971_v27 }
 0xee0   : > { %2746 = vmatmul.mubr.msk.f32.gmra.mxu0 %vm730_vm5, %v1968_v28 }
 0xee1   : > { %2752 = vmatmul.mubr.msk.f32.gmra.mxu1 %vm730_vm5, %v1972_v29 }
 0xf9c   : > { %v2744_v31 = vpop.f32.mrf.mxu0 }
 0xf9d   : > { %v2750_v32 = vpop.f32.mrf.mxu1  ;;  %v2081_v33 = vadd.f32 %v2744_v31, %v2475_v30 }
 0xf9e   : > { %v2101_v34 = vadd.f32 %v2750_v32, %v2475_v30  ;;  %v2075_v47 = vpop.f32.mrf.mxu0 }
 0xf9f   : > { %v2095_v48 = vpop.f32.mrf.mxu1  ;;  %2115 = vst.msk [vmem:[%s3110_s19 + $0x8] sm:$0xff] %vm560_vm3, %v2081_v33  ;;  %v2076_v49 = vadd.f32 %v2475_v30, %v2075_v47 }
 0xfa0   : > { %2119 = vst.msk [vmem:[%s3110_s19 + $0x28] sm:$0xff] %vm560_vm3, %v2101_v34  ;;  %v2096_v50 = vadd.f32 %v2475_v30, %v2095_v48  ;;  %v2747_v53 = vpop.f32.mrf.mxu0 }
 0xfa1   : > { %v2753_v54 = vpop.f32.mrf.mxu1  ;;  %2114 = vst.msk [vmem:[%s3110_s19] sm:$0xff] %vm560_vm3, %v2076_v49  ;;  %v2091_v55 = vadd.f32 %v2747_v53, %v2475_v30 }
 0xfa2   : > { %2118 = vst.msk [vmem:[%s3110_s19 + $0x20] sm:$0xff] %vm560_vm3, %v2096_v50  ;;  %v2111_v56 = vadd.f32 %v2753_v54, %v2475_v30  ;;  %v2085_v57 = vpop.f32.mrf.mxu0 }
 0xfa3   : > { %v2105_v58 = vpop.f32.mrf.mxu1  ;;  %2117 = vst.msk [vmem:[%s3110_s19 + $0x18] sm:$0xff] %vm560_vm3, %v2091_v55  ;;  %v2086_v60 = vadd.f32 %v2475_v30, %v2085_v57 }
 0xfa4   : > { %2121 = vst.msk [vmem:[%s3110_s19 + $0x38] sm:$0xff] %vm560_vm3, %v2111_v56  ;;  %v2106_v61 = vadd.f32 %v2475_v30, %v2105_v58 }
 0xfa5   : > { %2116 = vst.msk [vmem:[%s3110_s19 + $0x10] sm:$0xff] %vm560_vm3, %v2086_v60 }
 0xfa6   : > { %2120 = vst.msk [vmem:[%s3110_s19 + $0x30] sm:$0xff] %vm560_vm3, %v2106_v61 }
 0xfa7 PF: > { %2132 = sbr.rel (!%p3076_p11) target bundleno = 4019 (0xfb3), region = 121  ;;  %s2502_s23 = sshll.u32 (%p3076_p11), %s2929_s28, 4  ;;  %v2180_v62 = vld [vmem:[%s3108_s17] sm:$0xff] (%p3076_p11)  ;;  %v2182_v63 = vld [vmem:[%s3108_s17 + $0x8] sm:$0xff] (%p3076_p11)  ;;  %v2184_v0 = vld [vmem:[%s3108_s17 + $0x10] sm:$0xff] (%p3076_p11) }
 0xfa8   : > { %s2135_s16 = sadd.s32 (%p3076_p11), %s2933_s0, %s2502_s23  ;;  %v2186_v1 = vld [vmem:[%s3108_s17 + $0x18] sm:$0xff] (%p3076_p11)  ;;  %v2188_v2 = vld [vmem:[%s3108_s17 + $0x20] sm:$0xff] (%p3076_p11)  ;;  %v2190_v3 = vld [vmem:[%s3108_s17 + $0x28] sm:$0xff] (%p3076_p11)  ;;  %s3627_s20 = sld [smem:[#allocation16_spill]] (%p3076_p11) }
 0xfa9   : > { %s2488_s1 = sshll.u32 (%p3076_p11), %s2135_s16, 3  ;;  %v2192_v4 = vld [vmem:[%s3108_s17 + $0x30] sm:$0xff] (%p3076_p11)  ;;  %v2194_v5 = vld [vmem:[%s3108_s17 + $0x38] sm:$0xff] (%p3076_p11) }
 0xfae   : > { %s2137_s12 = scalar_lea.vmem %s3627_s20, %s2488_s1 }
 0xfaf   : > { %2181 = vst [vmem:[%s2137_s12] sm:$0xff] %v2180_v62  ;;  %2183 = vst [vmem:[%s2137_s12 + $0x10] sm:$0xff] %v2182_v63 }
 0xfb0   : > { %2185 = vst [vmem:[%s2137_s12 + $0x20] sm:$0xff] %v2184_v0  ;;  %2187 = vst [vmem:[%s2137_s12 + $0x30] sm:$0xff] %v2186_v1 }
 0xfb1   : > { %2189 = vst [vmem:[%s2137_s12 + $0x40] sm:$0xff] %v2188_v2  ;;  %2191 = vst [vmem:[%s2137_s12 + $0x50] sm:$0xff] %v2190_v3 }
 0xfb2   : > { %2193 = vst [vmem:[%s2137_s12 + $0x60] sm:$0xff] %v2192_v4  ;;  %2195 = vst [vmem:[%s2137_s12 + $0x70] sm:$0xff] %v2194_v5 }
 0xfb3 PF: > { %2201 = sbr.rel (!%p3076_p11) target bundleno = 4031 (0xfbf), region = 159  ;;  %s2503_s17 = sshll.u32 (%p3076_p11), %s2929_s28, 4  ;;  %v2249_v6 = vld [vmem:[%s3110_s19] sm:$0xff] (%p3076_p11)  ;;  %v2251_v59 = vld [vmem:[%s3110_s19 + $0x8] sm:$0xff] (%p3076_p11)  ;;  %v2253_v7 = vld [vmem:[%s3110_s19 + $0x10] sm:$0xff] (%p3076_p11) }
 0xfb4   : > { %s2204_s24 = sadd.s32 (%p3076_p11), %s2933_s0, %s2503_s17  ;;  %v2255_v8 = vld [vmem:[%s3110_s19 + $0x18] sm:$0xff] (%p3076_p11)  ;;  %v2257_v9 = vld [vmem:[%s3110_s19 + $0x20] sm:$0xff] (%p3076_p11)  ;;  %v2259_v10 = vld [vmem:[%s3110_s19 + $0x28] sm:$0xff] (%p3076_p11)  ;;  %s3628_s2 = sld [smem:[#allocation17_spill]] (%p3076_p11) }
 0xfb5   : > { %s2491_s18 = sshll.u32 (%p3076_p11), %s2204_s24, 3  ;;  %v2261_v11 = vld [vmem:[%s3110_s19 + $0x30] sm:$0xff] (%p3076_p11)  ;;  %v2263_v52 = vld [vmem:[%s3110_s19 + $0x38] sm:$0xff] (%p3076_p11) }
 0xfba   : > { %s2206_s21 = scalar_lea.vmem %s3628_s2, %s2491_s18 }
 0xfbb   : > { %2250 = vst [vmem:[%s2206_s21] sm:$0xff] %v2249_v6  ;;  %2252 = vst [vmem:[%s2206_s21 + $0x10] sm:$0xff] %v2251_v59 }
 0xfbc   : > { %2254 = vst [vmem:[%s2206_s21 + $0x20] sm:$0xff] %v2253_v7  ;;  %2256 = vst [vmem:[%s2206_s21 + $0x30] sm:$0xff] %v2255_v8 }
 0xfbd   : > { %2258 = vst [vmem:[%s2206_s21 + $0x40] sm:$0xff] %v2257_v9  ;;  %2260 = vst [vmem:[%s2206_s21 + $0x50] sm:$0xff] %v2259_v10 }
 0xfbe   : > { %2262 = vst [vmem:[%s2206_s21 + $0x60] sm:$0xff] %v2261_v11  ;;  %2264 = vst [vmem:[%s2206_s21 + $0x70] sm:$0xff] %v2263_v52 }
 0xfbf PF: > { %s29_s13 = sadd.s32 1, %s2945_s13   ;;  %s3629_s19 = sld [smem:[#allocation13_spill]] }
 0xfc0   : > { %p26_p8 = scmp.ge.s32.totalorder %s29_s13, 6   ;;  %s3630_s26 = smov %s2925_s27 }
 0xfc1   : > { %s3631_s27 = smov %s3084_s22  ;;  %s3632_s28 = smov %s2937_s29 }
 0xfc2   : > { %s3633_s0 = smov %s2941_s30  ;;  %s3635_s30 = smov %s3641_s15 }
 0xfc3   :  { %28 = sbr.rel (!%p26_p8) target bundleno = 21 (0x15), region = 262 }
 0xfc5   : > { %s3634_s29 = smov %s3629_s19 }

</bundles_post_ra>
